<compile_context>
chip_gen: v7x
topology: tpu7x:2x2x1
jax: 0.10.0
libtpu: 0.0.40
codegen_flags: <defaults>
</compile_context>

<pallas_src>
import functools

import jax
import jax.numpy as jnp
from jax.experimental import pallas as pl
from jax.experimental.pallas import tpu as pltpu

_MiB = 1024 * 1024
_ROW = lambda i: (i, 0)                    # row-tiled 2-D operand
_REP = lambda i: (0, 0)                    # resident 2-D operand (weights/biases)


# ---------------------------------------------------------------------------
# Helpers
# ---------------------------------------------------------------------------
def _layernorm(x, g, b, eps=1e-5):
    mean = jnp.mean(x, axis=-1, keepdims=True)
    xc = x - mean
    var = jnp.mean(xc * xc, axis=-1, keepdims=True)
    return xc * jax.lax.rsqrt(var + eps) * g + b


def _round_up(x, m):
    return (x + m - 1) // m * m


def _row_tiling(m, cap):
    """Row tile (multiple of 8, <= cap) and padded row count divisible by it."""
    nblk = max(1, -(-m // cap))
    tm = _round_up(-(-m // nblk), 8)
    return tm, _round_up(m, tm)


def _pad_rows(x, mp):
    m = x.shape[0]
    return x if m == mp else jnp.pad(x, ((0, mp - m), (0, 0)))


@functools.lru_cache(maxsize=None)
def _single_buffer_ok():
    """Probe (once, outside jit) whether constant-index weight blocks can be
    single-buffered with pipeline_mode=pl.Buffered(1)."""
    if not hasattr(pl, "Buffered"):
        return False
    def k(w_ref, x_ref, o_ref):
        o_ref[...] = x_ref[...] + w_ref[...]
    try:
        f = pl.pallas_call(
            k,
            out_shape=jax.ShapeDtypeStruct((16, 128), jnp.float32),
            grid=(2,),
            in_specs=[pl.BlockSpec((8, 128), _REP, pipeline_mode=pl.Buffered(1)),
                      pl.BlockSpec((8, 128), _ROW)],
            out_specs=pl.BlockSpec((8, 128), _ROW),
            compiler_params=pltpu.CompilerParams(
                dimension_semantics=("parallel",)),
        )
        w = jnp.ones((8, 128), jnp.float32)
        x = jnp.arange(16 * 128, dtype=jnp.float32).reshape(16, 128)
        out = jax.block_until_ready(f(w, x))
        return bool(jnp.allclose(out, x + 1.0))
    except Exception:
        return False


def _resident_spec(shape):
    """BlockSpec for a grid-invariant (resident) operand."""
    if _single_buffer_ok():
        return pl.BlockSpec(shape, _REP, pipeline_mode=pl.Buffered(1))
    return pl.BlockSpec(shape, _REP)


def _cparams(needed_bytes=0):
    """Parallel dimension semantics; explicit VMEM limit only when the rough
    footprint estimate exceeds the conservative default scoped limit."""
    limit = None
    if needed_bytes > 24 * _MiB:
        limit = int(min(needed_bytes + 8 * _MiB, 100 * _MiB))
    return pltpu.CompilerParams(dimension_semantics=("parallel",),
                                vmem_limit_bytes=limit)


# ---------------------------------------------------------------------------
# Kernel 1: norm1 + (+query_pos) + Q projection (scale pre-folded into wq)
# ---------------------------------------------------------------------------
def _norm1_qproj_kernel(has_qpos, x_ref, *refs):
    if has_qpos:
        qpos_ref, g1_ref, b1_ref, wq_ref, bq_ref, xn_ref, q_ref = refs
    else:
        g1_ref, b1_ref, wq_ref, bq_ref, xn_ref, q_ref = refs
    xn = _layernorm(x_ref[...], g1_ref[...], b1_ref[...])
    xn_ref[...] = xn.astype(xn_ref.dtype)
    qin = xn + qpos_ref[...] if has_qpos else xn
    q = jnp.dot(qin.astype(wq_ref.dtype), wq_ref[...],
                preferred_element_type=jnp.float32) + bq_ref[...]
    q_ref[...] = q.astype(q_ref.dtype)


def norm1_q_proj(x, qpos, g1, b1, wq_t, bq):
    M, E = x.shape
    tm, Mp = _row_tiling(M, cap=1024)
    has_qpos = qpos is not None
    ins = [_pad_rows(x, Mp)]
    in_specs = [pl.BlockSpec((tm, E), _ROW)]
    if has_qpos:
        ins.append(_pad_rows(qpos, Mp))
        in_specs.append(pl.BlockSpec((tm, E), _ROW))
    ins += [g1, b1, wq_t, bq]
    in_specs += [_resident_spec((1, E)), _resident_spec((1, E)),
                 _resident_spec((E, E)), _resident_spec((1, E))]
    nbuf_w = 1 if _single_buffer_ok() else 2
    needed = (E * E * wq_t.dtype.itemsize * nbuf_w
              + 2 * (3 + int(has_qpos)) * tm * E * 4)
    xn, q = pl.pallas_call(
        functools.partial(_norm1_qproj_kernel, has_qpos),
        out_shape=(jax.ShapeDtypeStruct((Mp, E), x.dtype),
                   jax.ShapeDtypeStruct((Mp, E), x.dtype)),
        grid=(Mp // tm,),
        in_specs=in_specs,
        out_specs=(pl.BlockSpec((tm, E), _ROW), pl.BlockSpec((tm, E), _ROW)),
        compiler_params=_cparams(needed),
    )(*ins)
    return xn[:M], q[:M]


# ---------------------------------------------------------------------------
# Kernel 2: K (+pos) and V projections in one pass over memory
# ---------------------------------------------------------------------------
def _kv_proj_kernel(has_pos, mem_ref, *refs):
    if has_pos:
        pos_ref, wk_ref, bk_ref, wv_ref, bv_ref, k_ref, v_ref = refs
    else:
        wk_ref, bk_ref, wv_ref, bv_ref, k_ref, v_ref = refs
    mem = mem_ref[...]
    kin = mem + pos_ref[...] if has_pos else mem
    k = jnp.dot(kin.astype(wk_ref.dtype), wk_ref[...],
                preferred_element_type=jnp.float32) + bk_ref[...]
    v = jnp.dot(mem.astype(wv_ref.dtype), wv_ref[...],
                preferred_element_type=jnp.float32) + bv_ref[...]
    k_ref[...] = k.astype(k_ref.dtype)
    v_ref[...] = v.astype(v_ref.dtype)


def kv_proj(mem, pos, wk_t, bk, wv_t, bv):
    M, E = mem.shape
    tm, Mp = _row_tiling(M, cap=1024)
    has_pos = pos is not None
    ins = [_pad_rows(mem, Mp)]
    in_specs = [pl.BlockSpec((tm, E), _ROW)]
    if has_pos:
        ins.append(_pad_rows(pos, Mp))
        in_specs.append(pl.BlockSpec((tm, E), _ROW))
    ins += [wk_t, bk, wv_t, bv]
    in_specs += [_resident_spec((E, E)), _resident_spec((1, E)),
                 _resident_spec((E, E)), _resident_spec((1, E))]
    nbuf_w = 1 if _single_buffer_ok() else 2
    needed = (2 * E * E * wk_t.dtype.itemsize * nbuf_w
              + 2 * (3 + int(has_pos)) * tm * E * 4)
    k, v = pl.pallas_call(
        functools.partial(_kv_proj_kernel, has_pos),
        out_shape=(jax.ShapeDtypeStruct((Mp, E), mem.dtype),
                   jax.ShapeDtypeStruct((Mp, E), mem.dtype)),
        grid=(Mp // tm,),
        in_specs=in_specs,
        out_specs=(pl.BlockSpec((tm, E), _ROW), pl.BlockSpec((tm, E), _ROW)),
        compiler_params=_cparams(needed),
    )(*ins)
    return k[:M], v[:M]


# ---------------------------------------------------------------------------
# Kernel 3: multi-head attention + out_proj + residual + norm2, fused per batch
# ---------------------------------------------------------------------------
def _attn_outproj_norm2_kernel(nhead, need_w, cdt,
                               q_ref, k_ref, v_ref, res_ref,
                               wo_ref, bo_ref, g2_ref, b2_ref,
                               o_ref, *opt_w_ref):
    q = q_ref[0]                                   # (L, E), already scaled
    k = k_ref[0]                                   # (S, E)
    v = v_ref[0]                                   # (S, E)
    wo = wo_ref[...]                               # (E, E) resident
    L, E = q.shape
    S = k.shape[0]
    Dh = E // nhead
    # TODO(synk): for long S, S-tile with an online softmax; for v7x, deepen
    #             the grid beyond N (e.g. (N, L-tiles)) to feed both TCs.
    # TODO(synk): head-major Q/K/V delivery would remove the sub-128 lane
    #             slices below (blocked by the (8,128) block-shape constraint
    #             on Dh-wide lane blocks).
    acc = jnp.zeros((L, E), jnp.float32)
    w_sum = jnp.zeros((L, S), jnp.float32) if need_w else None
    for h in range(nhead):                         # static, unrolled
        lo = h * Dh
        qh = q[:, lo:lo + Dh].astype(cdt)
        kh = k[:, lo:lo + Dh].astype(cdt)
        vh = v[:, lo:lo + Dh].astype(cdt)
        s = jax.lax.dot_general(qh, kh, (((1,), (1,)), ((), ())),
                                preferred_element_type=jnp.float32)  # (L, S)
        m = jnp.max(s, axis=-1, keepdims=True)
        p = jnp.exp(s - m)
        denom = jnp.sum(p, axis=-1, keepdims=True)
        w = p * pl.reciprocal(denom)               # exact (matches fp32 ref)
        if need_w:
            w_sum = w_sum + w
        oh = jnp.dot(w.astype(cdt), vh, preferred_element_type=jnp.float32)
        # Fold out_proj per head: out_proj(concat_h O_h) = sum_h O_h @ Wo_h
        acc = acc + jnp.dot(oh.astype(cdt), wo[lo:lo + Dh, :],
                            preferred_element_type=jnp.float32)
    y = acc + bo_ref[...] + res_ref[0]             # residual (norm1(tgt))
    o_ref[0] = _layernorm(y, g2_ref[...], b2_ref[...]).astype(o_ref.dtype)
    if need_w:
        w_out = opt_w_ref[0]
        w_out[0] = (w_sum * (1.0 / nhead)).astype(w_out.dtype)


def attention_core_fused(q, k, v, resid, wo_t, bo, g2, b2, nhead,
                         need_weights=True, compute_dtype=jnp.float32):
    N, L, E = q.shape
    S = k.shape[1]
    kern = functools.partial(_attn_outproj_norm2_kernel, nhead, need_weights,
                             compute_dtype)
    out_shape = [jax.ShapeDtypeStruct((N, L, E), q.dtype)]
    out_specs = [pl.BlockSpec((1, L, E), lambda i: (i, 0, 0))]
    if need_weights:
        out_shape.append(jax.ShapeDtypeStruct((N, L, S), jnp.float32))
        out_specs.append(pl.BlockSpec((1, L, S), lambda i: (i, 0, 0)))
    nbuf_w = 1 if _single_buffer_ok() else 2
    needed = (E * E * wo_t.dtype.itemsize * nbuf_w
              + 2 * ((2 * L + 2 * S) * E * 4 + L * E * 4
                     + (L * S * 4 if need_weights else 0))
              + 2 * L * S * 4 + L * E * 4)
    res = pl.pallas_call(
        kern,
        out_shape=tuple(out_shape),
        grid=(N,),
        in_specs=[pl.BlockSpec((1, L, E), lambda i: (i, 0, 0)),
                  pl.BlockSpec((1, S, E), lambda i: (i, 0, 0)),
                  pl.BlockSpec((1, S, E), lambda i: (i, 0, 0)),
                  pl.BlockSpec((1, L, E), lambda i: (i, 0, 0)),
                  _resident_spec((E, E)),
                  _resident_spec((1, E)),
                  _resident_spec((1, E)),
                  _resident_spec((1, E))],
        out_specs=tuple(out_specs),
        compiler_params=_cparams(needed),
    )(q, k, v, resid, wo_t, bo, g2, b2)
    if need_weights:
        o, w = res
        return o, w
    (o,) = res
    return o, None


# ---------------------------------------------------------------------------
# Kernel 4: linear1 + ReLU + linear2 + residual + norm3
# ---------------------------------------------------------------------------
def _ffn_norm3_kernel(x_ref, w1_ref, b1_ref, w2_ref, b2_ref, g3_ref, b3_ref,
                      o_ref):
    x = x_ref[...]
    h = jnp.dot(x.astype(w1_ref.dtype), w1_ref[...],
                preferred_element_type=jnp.float32) + b1_ref[...]
    h = jnp.maximum(h, 0.0)
    f = jnp.dot(h.astype(w2_ref.dtype), w2_ref[...],
                preferred_element_type=jnp.float32) + b2_ref[...]
    o_ref[...] = _layernorm(x + f, g3_ref[...], b3_ref[...]).astype(o_ref.dtype)


def ffn_add_norm(x, w1_t, b1, w2_t, b2, g3, b3):
    M, E = x.shape
    F = w1_t.shape[1]
    # TODO(synk): for very large E*F on v7x (64 MiB VMEM), add an F-tiled
    #             reduction axis with a (tm, E) accumulator instead of holding
    #             both (E,F) and (F,E) resident.
    tm, Mp = _row_tiling(M, cap=256)
    nbuf_w = 1 if _single_buffer_ok() else 2
    needed = (2 * E * F * w1_t.dtype.itemsize * nbuf_w
              + 2 * 2 * tm * E * 4 + tm * F * 4)
    out = pl.pallas_call(
        _ffn_norm3_kernel,
        out_shape=jax.ShapeDtypeStruct((Mp, E), x.dtype),
        grid=(Mp // tm,),
        in_specs=[pl.BlockSpec((tm, E), _ROW),
                  _resident_spec((E, F)),
                  _resident_spec((1, F)),
                  _resident_spec((F, E)),
                  _resident_spec((1, E)),
                  _resident_spec((1, E)),
                  _resident_spec((1, E))],
        out_specs=pl.BlockSpec((tm, E), _ROW),
        compiler_params=_cparams(needed),
    )(_pad_rows(x, Mp), w1_t, b1, w2_t, b2, g3, b3)
    return out[:M]


# ---------------------------------------------------------------------------
# Full decoder layer (forward_post semantics, eval mode)
# ---------------------------------------------------------------------------
def transformer_decoder_layer(tgt, memory, params, nhead, pos=None,
                              query_pos=None, need_weights=True):
    """tgt (L,N,E), memory (S,N,E) -> (out (L,N,E), head-avg attn weights (N,L,S))."""
    L, N, E = tgt.shape
    S = memory.shape[0]
    Mq, Mk = N * L, N * S
    p = params
    cdt = p["wo_t"].dtype   # matmul operand dtype (f32, or bf16 if use_bf16)

    # Batch-major internal layout: lane-dense (rows, E) slabs everywhere.
    # TODO(synk): fold these (L,N,E)->(N,L,E) reorders into BlockSpec
    #             index_maps; blocked by the (8,128) constraint when the small
    #             batch dim lands in the second-minor block position.
    tgt_b = jnp.transpose(tgt, (1, 0, 2)).reshape(Mq, E)
    qpos_b = (None if query_pos is None
              else jnp.transpose(query_pos, (1, 0, 2)).reshape(Mq, E))
    mem_b = jnp.transpose(memory, (1, 0, 2)).reshape(Mk, E)
    pos_b = (None if pos is None
             else jnp.transpose(pos, (1, 0, 2)).reshape(Mk, E))

    # forward_post computes self_attn but discards its output (tgt2/ws are
    # overwritten and `tgt = norm1(tgt)` ignores them), so only norm1 is
    # applied here -- exact w.r.t. the reference forward pass.
    tgt_n, q = norm1_q_proj(tgt_b, qpos_b, p["norm1_w"], p["norm1_b"],
                            p["wq_t"], p["bq"])
    k, v = kv_proj(mem_b, pos_b, p["wk_t"], p["bk"], p["wv_t"], p["bv"])

    # Cross attention + out_proj + residual + norm2 (fused; dropout2 = id).
    tgt2n, w_avg = attention_core_fused(
        q.reshape(N, L, E), k.reshape(N, S, E), v.reshape(N, S, E),
        tgt_n.reshape(N, L, E), p["wo_t"], p["bo"],
        p["norm2_w"], p["norm2_b"], nhead,
        need_weights=need_weights, compute_dtype=cdt)

    # tgt = norm3(tgt + linear2(relu(linear1(tgt))))   (dropout/dropout3 = id)
    out = ffn_add_norm(tgt2n.reshape(Mq, E), p["w1_t"], p["b1"], p["w2_t"],
                       p["b2"], p["norm3_w"], p["norm3_b"])

    out = jnp.transpose(out.reshape(N, L, E), (1, 0, 2))   # back to (L, N, E)
    return out, w_avg


# ---------------------------------------------------------------------------
# Parameters: PyTorch-layout construction + one-time kernel-layout prep
# ---------------------------------------------------------------------------
def make_params(key, d_model, nhead, dim_feedforward):
    ks = jax.random.split(key, 8)
    s = 0.02
    return {
        "in_proj_weight": s * jax.random.normal(ks[0], (3 * d_model, d_model), jnp.float32),
        "in_proj_bias": s * jax.random.normal(ks[1], (3 * d_model,), jnp.float32),
        "out_proj_weight": s * jax.random.normal(ks[2], (d_model, d_model), jnp.float32),
        "out_proj_bias": s * jax.random.normal(ks[3], (d_model,), jnp.float32),
        "lin1_w": s * jax.random.normal(ks[4], (dim_feedforward, d_model), jnp.float32),
        "lin1_b": s * jax.random.normal(ks[5], (dim_feedforward,), jnp.float32),
        "lin2_w": s * jax.random.normal(ks[6], (d_model, dim_feedforward), jnp.float32),
        "lin2_b": s * jax.random.normal(ks[7], (d_model,), jnp.float32),
        "norm1_w": jnp.ones((d_model,), jnp.float32),
        "norm1_b": jnp.zeros((d_model,), jnp.float32),
        "norm2_w": jnp.ones((d_model,), jnp.float32),
        "norm2_b": jnp.zeros((d_model,), jnp.float32),
        "norm3_w": jnp.ones((d_model,), jnp.float32),
        "norm3_b": jnp.zeros((d_model,), jnp.float32),
    }


def prepare_params(raw, d_model, nhead, use_bf16=False):
    """One-time prep outside the hot path: pre-transpose weights, fold the
    1/sqrt(Dh) attention scale into the Q projection, optional bf16 weights."""
    _single_buffer_ok()            # warm the Buffered(1) probe outside jit
    E = d_model
    scale = 1.0 / float(E // nhead) ** 0.5
    wdt = jnp.bfloat16 if use_bf16 else jnp.float32
    Wi, bi = raw["in_proj_weight"], raw["in_proj_bias"]
    return {
        "wq_t": (Wi[:E].T * scale).astype(wdt),
        "wk_t": Wi[E:2 * E].T.astype(wdt),
        "wv_t": Wi[2 * E:].T.astype(wdt),
        "bq": (bi[:E] * scale).reshape(1, E),
        "bk": bi[E:2 * E].reshape(1, E),
        "bv": bi[2 * E:].reshape(1, E),
        "wo_t": raw["out_proj_weight"].T.astype(wdt),
        "bo": raw["out_proj_bias"].reshape(1, E),
        "w1_t": raw["lin1_w"].T.astype(wdt), "b1": raw["lin1_b"].reshape(1, -1),
        "w2_t": raw["lin2_w"].T.astype(wdt), "b2": raw["lin2_b"].reshape(1, E),
        "norm1_w": raw["norm1_w"].reshape(1, E), "norm1_b": raw["norm1_b"].reshape(1, E),
        "norm2_w": raw["norm2_w"].reshape(1, E), "norm2_b": raw["norm2_b"].reshape(1, E),
        "norm3_w": raw["norm3_w"].reshape(1, E), "norm3_b": raw["norm3_b"].reshape(1, E),
    }


# ---------------------------------------------------------------------------
# Pure-JAX reference (forward_post semantics) for a sanity check
# ---------------------------------------------------------------------------
def _reference(tgt, memory, raw, nhead, pos, query_pos):
    E = tgt.shape[-1]
    Dh = E // nhead

    def ln(x, w, b):
        m = x.mean(-1, keepdims=True)
        v = ((x - m) ** 2).mean(-1, keepdims=True)
        return (x - m) * jax.lax.rsqrt(v + 1e-5) * w + b

    tgt_n = ln(tgt, raw["norm1_w"], raw["norm1_b"])
    qin = tgt_n + query_pos if query_pos is not None else tgt_n
    kin = memory + pos if pos is not None else memory
    Wi, bi = raw["in_proj_weight"], raw["in_proj_bias"]
    q = qin @ Wi[:E].T + bi[:E]
    k = kin @ Wi[E:2 * E].T + bi[E:2 * E]
    v = memory @ Wi[2 * E:].T + bi[2 * E:]
    L, N, _ = q.shape
    S = k.shape[0]
    qh = q.reshape(L, N, nhead, Dh).transpose(1, 2, 0, 3)
    kh = k.reshape(S, N, nhead, Dh).transpose(1, 2, 0, 3)
    vh = v.reshape(S, N, nhead, Dh).transpose(1, 2, 0, 3)
    scores = jnp.einsum("nhld,nhsd->nhls", qh, kh) / jnp.sqrt(float(Dh))
    w_attn = jax.nn.softmax(scores, axis=-1)
    o = jnp.einsum("nhls,nhsd->nhld", w_attn, vh)
    o = o.transpose(2, 0, 1, 3).reshape(L, N, E)
    attn_out = o @ raw["out_proj_weight"].T + raw["out_proj_bias"]
    x = ln(tgt_n + attn_out, raw["norm2_w"], raw["norm2_b"])
    ffn = (jnp.maximum(x @ raw["lin1_w"].T + raw["lin1_b"], 0.0)
           @ raw["lin2_w"].T + raw["lin2_b"])
    out = ln(x + ffn, raw["norm3_w"], raw["norm3_b"])
    return out, w_attn.mean(axis=1)


# ---------------------------------------------------------------------------
# Demo
# ---------------------------------------------------------------------------
if __name__ == "__main__":
    d_model, nhead, dim_feedforward = 32, 4, 64
    L, S, N = 8, 16, 2          # tgt seq, memory seq, batch

    key = jax.random.PRNGKey(0)
    k_tgt, k_mem, k_qpos, k_pos, k_par = jax.random.split(key, 5)
    tgt = jax.random.normal(k_tgt, (L, N, d_model), jnp.float32)
    memory = jax.random.normal(k_mem, (S, N, d_model), jnp.float32)
    query_pos = jax.random.normal(k_qpos, (L, N, d_model), jnp.float32)
    pos = jax.random.normal(k_pos, (S, N, d_model), jnp.float32)

    raw = make_params(k_par, d_model, nhead, dim_feedforward)
    params = prepare_params(raw, d_model, nhead, use_bf16=False)

    layer = jax.jit(functools.partial(transformer_decoder_layer, nhead=nhead))
    out, attn_w = layer(tgt, memory, params, pos=pos, query_pos=query_pos)
    jax.block_until_ready((out, attn_w))
    assert out.shape == (L, N, d_model)
    assert attn_w.shape == (N, L, S)

    out_ref, w_ref = _reference(tgt, memory, raw, nhead, pos, query_pos)
    assert jnp.allclose(out, out_ref, atol=2e-2, rtol=2e-2), "output mismatch"
    assert jnp.allclose(attn_w, w_ref, atol=2e-2, rtol=2e-2), "attn-weight mismatch"
    print("KERNEL_OK")
</pallas_src>

<mosaic_0001>
module attributes {stable_mosaic.version = 11 : i64} {
  func.func @k(%arg0: i32, %arg1: memref<8x128xf32, #tpu.memory_space<vmem>>, %arg2: memref<8x128xf32, #tpu.memory_space<vmem>>, %arg3: memref<8x128xf32, #tpu.memory_space<vmem>>) attributes {dimension_semantics = [#tpu.dimension_semantics<parallel>], iteration_bounds = array<i64: 2>, scalar_prefetch = 0 : i64, scratch_operands = 0 : i64, tpu.core_type = #tpu.core_type<tc>, window_params = [{pipeline_mode = #tpu.pipeline_mode<synchronous>, transform_indices = @transform_0, window_bounds = array<i64: 8, 128>}, {transform_indices = @transform_1, window_bounds = array<i64: 8, 128>}, {transform_indices = @transform_2, window_bounds = array<i64: 8, 128>}]} {
    %c0 = arith.constant 0 : index
    %c0_0 = arith.constant 0 : index
    %0 = vector.load %arg2[%c0, %c0_0] : memref<8x128xf32, #tpu.memory_space<vmem>>, vector<8x128xf32>
    %c0_1 = arith.constant 0 : index
    %c0_2 = arith.constant 0 : index
    %1 = vector.load %arg1[%c0_1, %c0_2] : memref<8x128xf32, #tpu.memory_space<vmem>>, vector<8x128xf32>
    %2 = arith.addf %0, %1 : vector<8x128xf32>
    %c0_3 = arith.constant 0 : index
    %c0_4 = arith.constant 0 : index
    %3 = vector.load %arg3[%c0_3, %c0_4] : memref<8x128xf32, #tpu.memory_space<vmem>>, vector<8x128xf32>
    tpu.vector_store %arg3[%c0_3, %c0_4], %2 {strides = array<i32>} : memref<8x128xf32, #tpu.memory_space<vmem>>, vector<8x128xf32>,
    return
  }
  func.func @transform_0(%arg0: i32) -> (i32, i32) {
    %c0_i32 = arith.constant 0 : i32
    %c0_i32_0 = arith.constant 0 : i32
    %c0_i32_1 = arith.constant 0 : i32
    return %c0_i32, %c0_i32_0 : i32, i32
  }
  func.func @transform_1(%arg0: i32) -> (i32, i32) {
    %c0_i32 = arith.constant 0 : i32
    %c0_i32_0 = arith.constant 0 : i32
    return %arg0, %c0_i32 : i32, i32
  }
  func.func @transform_2(%arg0: i32) -> (i32, i32) {
    %c0_i32 = arith.constant 0 : i32
    %c0_i32_0 = arith.constant 0 : i32
    return %arg0, %c0_i32 : i32, i32
  }
}

module attributes {stable_mosaic.version = 11 : i64} {
  func.func @_norm1_qproj_kernel(%arg0: i32, %arg1: memref<16x32xf32, #tpu.memory_space<vmem>>, %arg2: memref<16x32xf32, #tpu.memory_space<vmem>>, %arg3: memref<1x32xf32, #tpu.memory_space<vmem>>, %arg4: memref<1x32xf32, #tpu.memory_space<vmem>>, %arg5: memref<32x32xf32, #tpu.memory_space<vmem>>, %arg6: memref<1x32xf32, #tpu.memory_space<vmem>>, %arg7: memref<16x32xf32, #tpu.memory_space<vmem>>, %arg8: memref<16x32xf32, #tpu.memory_space<vmem>>) attributes {dimension_semantics = [#tpu.dimension_semantics<parallel>], iteration_bounds = array<i64: 1>, scalar_prefetch = 0 : i64, scratch_operands = 0 : i64, tpu.core_type = #tpu.core_type<tc>, window_params = [{transform_indices = @transform_0, window_bounds = array<i64: 16, 32>}, {transform_indices = @transform_1, window_bounds = array<i64: 16, 32>}, {pipeline_mode = #tpu.pipeline_mode<synchronous>, transform_indices = @transform_2, window_bounds = array<i64: 1, 32>}, {pipeline_mode = #tpu.pipeline_mode<synchronous>, transform_indices = @transform_3, window_bounds = array<i64: 1, 32>}, {pipeline_mode = #tpu.pipeline_mode<synchronous>, transform_indices = @transform_4, window_bounds = array<i64: 32, 32>}, {pipeline_mode = #tpu.pipeline_mode<synchronous>, transform_indices = @transform_5, window_bounds = array<i64: 1, 32>}, {transform_indices = @transform_6, window_bounds = array<i64: 16, 32>}, {transform_indices = @transform_7, window_bounds = array<i64: 16, 32>}]} {
    %c0 = arith.constant 0 : index
    %c0_0 = arith.constant 0 : index
    %0 = vector.load %arg1[%c0, %c0_0] : memref<16x32xf32, #tpu.memory_space<vmem>>, vector<16x32xf32>
    %c0_1 = arith.constant 0 : index
    %c0_2 = arith.constant 0 : index
    %1 = vector.load %arg3[%c0_1, %c0_2] : memref<1x32xf32, #tpu.memory_space<vmem>>, vector<1x32xf32>
    %c0_3 = arith.constant 0 : index
    %c0_4 = arith.constant 0 : index
    %2 = vector.load %arg4[%c0_3, %c0_4] : memref<1x32xf32, #tpu.memory_space<vmem>>, vector<1x32xf32>
    %cst = arith.constant dense<0.000000e+00> : vector<16xf32>
    %3 = vector.multi_reduction <add>, %0, %cst [1] : vector<16x32xf32> to vector<16xf32>
    %4 = vector.shape_cast %3 : vector<16xf32> to vector<16x1xf32>
    %cst_5 = arith.constant 3.200000e+01 : f32
    %5 = vector.broadcast %cst_5 : f32 to vector<16x1xf32>
    %6 = arith.divf %4, %5 : vector<16x1xf32>
    %7 = vector.broadcast %6 : vector<16x1xf32> to vector<16x32xf32>
    %8 = arith.subf %0, %7 : vector<16x32xf32>
    %9 = arith.mulf %8, %8 : vector<16x32xf32>
    %cst_6 = arith.constant dense<0.000000e+00> : vector<16xf32>
    %10 = vector.multi_reduction <add>, %9, %cst_6 [1] : vector<16x32xf32> to vector<16xf32>
    %11 = vector.shape_cast %10 : vector<16xf32> to vector<16x1xf32>
    %cst_7 = arith.constant 3.200000e+01 : f32
    %12 = vector.broadcast %cst_7 : f32 to vector<16x1xf32>
    %13 = arith.divf %11, %12 : vector<16x1xf32>
    %cst_8 = arith.constant 9.99999974E-6 : f32
    %14 = vector.broadcast %cst_8 : f32 to vector<16x1xf32>
    %15 = arith.addf %13, %14 : vector<16x1xf32>
    %16 = math.rsqrt %15 : vector<16x1xf32>
    %17 = vector.broadcast %16 : vector<16x1xf32> to vector<16x32xf32>
    %18 = arith.mulf %8, %17 : vector<16x32xf32>
    %19 = vector.broadcast %1 : vector<1x32xf32> to vector<16x32xf32>
    %20 = arith.mulf %18, %19 : vector<16x32xf32>
    %21 = vector.broadcast %2 : vector<1x32xf32> to vector<16x32xf32>
    %22 = arith.addf %20, %21 : vector<16x32xf32>
    %c0_9 = arith.constant 0 : index
    %c0_10 = arith.constant 0 : index
    %23 = vector.load %arg7[%c0_9, %c0_10] : memref<16x32xf32, #tpu.memory_space<vmem>>, vector<16x32xf32>
    tpu.vector_store %arg7[%c0_9, %c0_10], %22 {strides = array<i32>} : memref<16x32xf32, #tpu.memory_space<vmem>>, vector<16x32xf32>,
    %c0_11 = arith.constant 0 : index
    %c0_12 = arith.constant 0 : index
    %24 = vector.load %arg2[%c0_11, %c0_12] : memref<16x32xf32, #tpu.memory_space<vmem>>, vector<16x32xf32>
    %25 = arith.addf %22, %24 : vector<16x32xf32>
    %c0_13 = arith.constant 0 : index
    %c0_14 = arith.constant 0 : index
    %26 = vector.load %arg5[%c0_13, %c0_14] : memref<32x32xf32, #tpu.memory_space<vmem>>, vector<32x32xf32>
    %cst_15 = arith.constant dense<0.000000e+00> : vector<16x32xf32>
    %27 = tpu.matmul %25, %26, %cst_15 {dimension_numbers = #tpu.dot_dimension_numbers<[1], [0], [0], [1], [0, 0, 1, 1], [], []>} : vector<16x32xf32>, vector<32x32xf32>, vector<16x32xf32> -> vector<16x32xf32>
    %c0_16 = arith.constant 0 : index
    %c0_17 = arith.constant 0 : index
    %28 = vector.load %arg6[%c0_16, %c0_17] : memref<1x32xf32, #tpu.memory_space<vmem>>, vector<1x32xf32>
    %29 = vector.broadcast %28 : vector<1x32xf32> to vector<16x32xf32>
    %30 = arith.addf %27, %29 : vector<16x32xf32>
    %c0_18 = arith.constant 0 : index
    %c0_19 = arith.constant 0 : index
    %31 = vector.load %arg8[%c0_18, %c0_19] : memref<16x32xf32, #tpu.memory_space<vmem>>, vector<16x32xf32>
    tpu.vector_store %arg8[%c0_18, %c0_19], %30 {strides = array<i32>} : memref<16x32xf32, #tpu.memory_space<vmem>>, vector<16x32xf32>,
    return
  }
  func.func @transform_0(%arg0: i32) -> (i32, i32) {
    %c0_i32 = arith.constant 0 : i32
    %c0_i32_0 = arith.constant 0 : i32
    return %arg0, %c0_i32 : i32, i32
  }
  func.func @transform_1(%arg0: i32) -> (i32, i32) {
    %c0_i32 = arith.constant 0 : i32
    %c0_i32_0 = arith.constant 0 : i32
    return %arg0, %c0_i32 : i32, i32
  }
  func.func @transform_2(%arg0: i32) -> (i32, i32) {
    %c0_i32 = arith.constant 0 : i32
    %c0_i32_0 = arith.constant 0 : i32
    %c0_i32_1 = arith.constant 0 : i32
    return %c0_i32, %c0_i32_0 : i32, i32
  }
  func.func @transform_3(%arg0: i32) -> (i32, i32) {
    %c0_i32 = arith.constant 0 : i32
    %c0_i32_0 = arith.constant 0 : i32
    %c0_i32_1 = arith.constant 0 : i32
    return %c0_i32, %c0_i32_0 : i32, i32
  }
  func.func @transform_4(%arg0: i32) -> (i32, i32) {
    %c0_i32 = arith.constant 0 : i32
    %c0_i32_0 = arith.constant 0 : i32
    %c0_i32_1 = arith.constant 0 : i32
    return %c0_i32, %c0_i32_0 : i32, i32
  }
  func.func @transform_5(%arg0: i32) -> (i32, i32) {
    %c0_i32 = arith.constant 0 : i32
    %c0_i32_0 = arith.constant 0 : i32
    %c0_i32_1 = arith.constant 0 : i32
    return %c0_i32, %c0_i32_0 : i32, i32
  }
  func.func @transform_6(%arg0: i32) -> (i32, i32) {
    %c0_i32 = arith.constant 0 : i32
    %c0_i32_0 = arith.constant 0 : i32
    return %arg0, %c0_i32 : i32, i32
  }
  func.func @transform_7(%arg0: i32) -> (i32, i32) {
    %c0_i32 = arith.constant 0 : i32
    %c0_i32_0 = arith.constant 0 : i32
    return %arg0, %c0_i32 : i32, i32
  }
}

module attributes {stable_mosaic.version = 11 : i64} {
  func.func @_attn_outproj_norm2_kernel(%arg0: i32, %arg1: memref<1x8x32xf32, #tpu.memory_space<vmem>>, %arg2: memref<1x16x32xf32, #tpu.memory_space<vmem>>, %arg3: memref<1x16x32xf32, #tpu.memory_space<vmem>>, %arg4: memref<1x8x32xf32, #tpu.memory_space<vmem>>, %arg5: memref<32x32xf32, #tpu.memory_space<vmem>>, %arg6: memref<1x32xf32, #tpu.memory_space<vmem>>, %arg7: memref<1x32xf32, #tpu.memory_space<vmem>>, %arg8: memref<1x32xf32, #tpu.memory_space<vmem>>, %arg9: memref<1x8x32xf32, #tpu.memory_space<vmem>>, %arg10: memref<1x8x16xf32, #tpu.memory_space<vmem>>) attributes {dimension_semantics = [#tpu.dimension_semantics<parallel>], iteration_bounds = array<i64: 2>, scalar_prefetch = 0 : i64, scratch_operands = 0 : i64, tpu.core_type = #tpu.core_type<tc>, window_params = [{transform_indices = @transform_0, window_bounds = array<i64: 1, 8, 32>}, {transform_indices = @transform_1, window_bounds = array<i64: 1, 16, 32>}, {transform_indices = @transform_2, window_bounds = array<i64: 1, 16, 32>}, {transform_indices = @transform_3, window_bounds = array<i64: 1, 8, 32>}, {pipeline_mode = #tpu.pipeline_mode<synchronous>, transform_indices = @transform_4, window_bounds = array<i64: 32, 32>}, {pipeline_mode = #tpu.pipeline_mode<synchronous>, transform_indices = @transform_5, window_bounds = array<i64: 1, 32>}, {pipeline_mode = #tpu.pipeline_mode<synchronous>, transform_indices = @transform_6, window_bounds = array<i64: 1, 32>}, {pipeline_mode = #tpu.pipeline_mode<synchronous>, transform_indices = @transform_7, window_bounds = array<i64: 1, 32>}, {transform_indices = @transform_8, window_bounds = array<i64: 1, 8, 32>}, {transform_indices = @transform_9, window_bounds = array<i64: 1, 8, 16>}]} {
    %c0 = arith.constant 0 : index
    %c0_0 = arith.constant 0 : index
    %c0_1 = arith.constant 0 : index
    %0 = vector.load %arg1[%c0, %c0_0, %c0_1] : memref<1x8x32xf32, #tpu.memory_space<vmem>>, vector<1x8x32xf32>
    %1 = vector.shape_cast %0 : vector<1x8x32xf32> to vector<8x32xf32>
    %c0_2 = arith.constant 0 : index
    %c0_3 = arith.constant 0 : index
    %c0_4 = arith.constant 0 : index
    %2 = vector.load %arg2[%c0_2, %c0_3, %c0_4] : memref<1x16x32xf32, #tpu.memory_space<vmem>>, vector<1x16x32xf32>
    %3 = vector.shape_cast %2 : vector<1x16x32xf32> to vector<16x32xf32>
    %c0_5 = arith.constant 0 : index
    %c0_6 = arith.constant 0 : index
    %c0_7 = arith.constant 0 : index
    %4 = vector.load %arg3[%c0_5, %c0_6, %c0_7] : memref<1x16x32xf32, #tpu.memory_space<vmem>>, vector<1x16x32xf32>
    %5 = vector.shape_cast %4 : vector<1x16x32xf32> to vector<16x32xf32>
    %c0_8 = arith.constant 0 : index
    %c0_9 = arith.constant 0 : index
    %6 = vector.load %arg5[%c0_8, %c0_9] : memref<32x32xf32, #tpu.memory_space<vmem>>, vector<32x32xf32>
    %cst = arith.constant 0.000000e+00 : f32
    %7 = vector.broadcast %cst : f32 to vector<8x32xf32>
    %cst_10 = arith.constant 0.000000e+00 : f32
    %8 = vector.broadcast %cst_10 : f32 to vector<8x16xf32>
    %9 = vector.extract_strided_slice %1 {offsets = [0, 0], sizes = [8, 8], strides = [1, 1]} : vector<8x32xf32> to vector<8x8xf32>
    %10 = vector.extract_strided_slice %3 {offsets = [0, 0], sizes = [16, 8], strides = [1, 1]} : vector<16x32xf32> to vector<16x8xf32>
    %11 = vector.extract_strided_slice %5 {offsets = [0, 0], sizes = [16, 8], strides = [1, 1]} : vector<16x32xf32> to vector<16x8xf32>
    %cst_11 = arith.constant dense<0.000000e+00> : vector<8x16xf32>
    %12 = tpu.matmul %9, %10, %cst_11 {dimension_numbers = #tpu.dot_dimension_numbers<[1], [1], [0], [0], [0, 0, 1, 0], [], []>} : vector<8x8xf32>, vector<16x8xf32>, vector<8x16xf32> -> vector<8x16xf32>
    %cst_12 = arith.constant dense<0xFF800000> : vector<8xf32>
    %13 = vector.multi_reduction <maximumf>, %12, %cst_12 [1] : vector<8x16xf32> to vector<8xf32>
    %14 = vector.shape_cast %13 : vector<8xf32> to vector<8x1xf32>
    %15 = vector.broadcast %14 : vector<8x1xf32> to vector<8x16xf32>
    %16 = arith.subf %12, %15 : vector<8x16xf32>
    %17 = math.exp %16 : vector<8x16xf32>
    %cst_13 = arith.constant dense<0.000000e+00> : vector<8xf32>
    %18 = vector.multi_reduction <add>, %17, %cst_13 [1] : vector<8x16xf32> to vector<8xf32>
    %19 = vector.shape_cast %18 : vector<8xf32> to vector<8x1xf32>
    %20 = tpu.reciprocal %19 : vector<8x1xf32> -> vector<8x1xf32>
    %21 = vector.broadcast %20 : vector<8x1xf32> to vector<8x16xf32>
    %22 = arith.mulf %17, %21 : vector<8x16xf32>
    %23 = arith.addf %8, %22 : vector<8x16xf32>
    %cst_14 = arith.constant dense<0.000000e+00> : vector<8x8xf32>
    %24 = tpu.matmul %22, %11, %cst_14 {dimension_numbers = #tpu.dot_dimension_numbers<[1], [0], [0], [1], [0, 0, 1, 1], [], []>} : vector<8x16xf32>, vector<16x8xf32>, vector<8x8xf32> -> vector<8x8xf32>
    %25 = vector.extract_strided_slice %6 {offsets = [0, 0], sizes = [8, 32], strides = [1, 1]} : vector<32x32xf32> to vector<8x32xf32>
    %cst_15 = arith.constant dense<0.000000e+00> : vector<8x32xf32>
    %26 = tpu.matmul %24, %25, %cst_15 {dimension_numbers = #tpu.dot_dimension_numbers<[1], [0], [0], [1], [0, 0, 1, 1], [], []>} : vector<8x8xf32>, vector<8x32xf32>, vector<8x32xf32> -> vector<8x32xf32>
    %27 = arith.addf %7, %26 : vector<8x32xf32>
    %28 = vector.extract_strided_slice %1 {offsets = [0, 8], sizes = [8, 8], strides = [1, 1]} : vector<8x32xf32> to vector<8x8xf32>
    %29 = vector.extract_strided_slice %3 {offsets = [0, 8], sizes = [16, 8], strides = [1, 1]} : vector<16x32xf32> to vector<16x8xf32>
    %30 = vector.extract_strided_slice %5 {offsets = [0, 8], sizes = [16, 8], strides = [1, 1]} : vector<16x32xf32> to vector<16x8xf32>
    %cst_16 = arith.constant dense<0.000000e+00> : vector<8x16xf32>
    %31 = tpu.matmul %28, %29, %cst_16 {dimension_numbers = #tpu.dot_dimension_numbers<[1], [1], [0], [0], [0, 0, 1, 0], [], []>} : vector<8x8xf32>, vector<16x8xf32>, vector<8x16xf32> -> vector<8x16xf32>
    %cst_17 = arith.constant dense<0xFF800000> : vector<8xf32>
    %32 = vector.multi_reduction <maximumf>, %31, %cst_17 [1] : vector<8x16xf32> to vector<8xf32>
    %33 = vector.shape_cast %32 : vector<8xf32> to vector<8x1xf32>
    %34 = vector.broadcast %33 : vector<8x1xf32> to vector<8x16xf32>
    %35 = arith.subf %31, %34 : vector<8x16xf32>
    %36 = math.exp %35 : vector<8x16xf32>
    %cst_18 = arith.constant dense<0.000000e+00> : vector<8xf32>
    %37 = vector.multi_reduction <add>, %36, %cst_18 [1] : vector<8x16xf32> to vector<8xf32>
    %38 = vector.shape_cast %37 : vector<8xf32> to vector<8x1xf32>
    %39 = tpu.reciprocal %38 : vector<8x1xf32> -> vector<8x1xf32>
    %40 = vector.broadcast %39 : vector<8x1xf32> to vector<8x16xf32>
    %41 = arith.mulf %36, %40 : vector<8x16xf32>
    %42 = arith.addf %23, %41 : vector<8x16xf32>
    %cst_19 = arith.constant dense<0.000000e+00> : vector<8x8xf32>
    %43 = tpu.matmul %41, %30, %cst_19 {dimension_numbers = #tpu.dot_dimension_numbers<[1], [0], [0], [1], [0, 0, 1, 1], [], []>} : vector<8x16xf32>, vector<16x8xf32>, vector<8x8xf32> -> vector<8x8xf32>
    %44 = vector.extract_strided_slice %6 {offsets = [8, 0], sizes = [8, 32], strides = [1, 1]} : vector<32x32xf32> to vector<8x32xf32>
    %cst_20 = arith.constant dense<0.000000e+00> : vector<8x32xf32>
    %45 = tpu.matmul %43, %44, %cst_20 {dimension_numbers = #tpu.dot_dimension_numbers<[1], [0], [0], [1], [0, 0, 1, 1], [], []>} : vector<8x8xf32>, vector<8x32xf32>, vector<8x32xf32> -> vector<8x32xf32>
    %46 = arith.addf %27, %45 : vector<8x32xf32>
    %47 = vector.extract_strided_slice %1 {offsets = [0, 16], sizes = [8, 8], strides = [1, 1]} : vector<8x32xf32> to vector<8x8xf32>
    %48 = vector.extract_strided_slice %3 {offsets = [0, 16], sizes = [16, 8], strides = [1, 1]} : vector<16x32xf32> to vector<16x8xf32>
    %49 = vector.extract_strided_slice %5 {offsets = [0, 16], sizes = [16, 8], strides = [1, 1]} : vector<16x32xf32> to vector<16x8xf32>
    %cst_21 = arith.constant dense<0.000000e+00> : vector<8x16xf32>
    %50 = tpu.matmul %47, %48, %cst_21 {dimension_numbers = #tpu.dot_dimension_numbers<[1], [1], [0], [0], [0, 0, 1, 0], [], []>} : vector<8x8xf32>, vector<16x8xf32>, vector<8x16xf32> -> vector<8x16xf32>
    %cst_22 = arith.constant dense<0xFF800000> : vector<8xf32>
    %51 = vector.multi_reduction <maximumf>, %50, %cst_22 [1] : vector<8x16xf32> to vector<8xf32>
    %52 = vector.shape_cast %51 : vector<8xf32> to vector<8x1xf32>
    %53 = vector.broadcast %52 : vector<8x1xf32> to vector<8x16xf32>
    %54 = arith.subf %50, %53 : vector<8x16xf32>
    %55 = math.exp %54 : vector<8x16xf32>
    %cst_23 = arith.constant dense<0.000000e+00> : vector<8xf32>
    %56 = vector.multi_reduction <add>, %55, %cst_23 [1] : vector<8x16xf32> to vector<8xf32>
    %57 = vector.shape_cast %56 : vector<8xf32> to vector<8x1xf32>
    %58 = tpu.reciprocal %57 : vector<8x1xf32> -> vector<8x1xf32>
    %59 = vector.broadcast %58 : vector<8x1xf32> to vector<8x16xf32>
    %60 = arith.mulf %55, %59 : vector<8x16xf32>
    %61 = arith.addf %42, %60 : vector<8x16xf32>
    %cst_24 = arith.constant dense<0.000000e+00> : vector<8x8xf32>
    %62 = tpu.matmul %60, %49, %cst_24 {dimension_numbers = #tpu.dot_dimension_numbers<[1], [0], [0], [1], [0, 0, 1, 1], [], []>} : vector<8x16xf32>, vector<16x8xf32>, vector<8x8xf32> -> vector<8x8xf32>
    %63 = vector.extract_strided_slice %6 {offsets = [16, 0], sizes = [8, 32], strides = [1, 1]} : vector<32x32xf32> to vector<8x32xf32>
    %cst_25 = arith.constant dense<0.000000e+00> : vector<8x32xf32>
    %64 = tpu.matmul %62, %63, %cst_25 {dimension_numbers = #tpu.dot_dimension_numbers<[1], [0], [0], [1], [0, 0, 1, 1], [], []>} : vector<8x8xf32>, vector<8x32xf32>, vector<8x32xf32> -> vector<8x32xf32>
    %65 = arith.addf %46, %64 : vector<8x32xf32>
    %66 = vector.extract_strided_slice %1 {offsets = [0, 24], sizes = [8, 8], strides = [1, 1]} : vector<8x32xf32> to vector<8x8xf32>
    %67 = vector.extract_strided_slice %3 {offsets = [0, 24], sizes = [16, 8], strides = [1, 1]} : vector<16x32xf32> to vector<16x8xf32>
    %68 = vector.extract_strided_slice %5 {offsets = [0, 24], sizes = [16, 8], strides = [1, 1]} : vector<16x32xf32> to vector<16x8xf32>
    %cst_26 = arith.constant dense<0.000000e+00> : vector<8x16xf32>
    %69 = tpu.matmul %66, %67, %cst_26 {dimension_numbers = #tpu.dot_dimension_numbers<[1], [1], [0], [0], [0, 0, 1, 0], [], []>} : vector<8x8xf32>, vector<16x8xf32>, vector<8x16xf32> -> vector<8x16xf32>
    %cst_27 = arith.constant dense<0xFF800000> : vector<8xf32>
    %70 = vector.multi_reduction <maximumf>, %69, %cst_27 [1] : vector<8x16xf32> to vector<8xf32>
    %71 = vector.shape_cast %70 : vector<8xf32> to vector<8x1xf32>
    %72 = vector.broadcast %71 : vector<8x1xf32> to vector<8x16xf32>
    %73 = arith.subf %69, %72 : vector<8x16xf32>
    %74 = math.exp %73 : vector<8x16xf32>
    %cst_28 = arith.constant dense<0.000000e+00> : vector<8xf32>
    %75 = vector.multi_reduction <add>, %74, %cst_28 [1] : vector<8x16xf32> to vector<8xf32>
    %76 = vector.shape_cast %75 : vector<8xf32> to vector<8x1xf32>
    %77 = tpu.reciprocal %76 : vector<8x1xf32> -> vector<8x1xf32>
    %78 = vector.broadcast %77 : vector<8x1xf32> to vector<8x16xf32>
    %79 = arith.mulf %74, %78 : vector<8x16xf32>
    %80 = arith.addf %61, %79 : vector<8x16xf32>
    %cst_29 = arith.constant dense<0.000000e+00> : vector<8x8xf32>
    %81 = tpu.matmul %79, %68, %cst_29 {dimension_numbers = #tpu.dot_dimension_numbers<[1], [0], [0], [1], [0, 0, 1, 1], [], []>} : vector<8x16xf32>, vector<16x8xf32>, vector<8x8xf32> -> vector<8x8xf32>
    %82 = vector.extract_strided_slice %6 {offsets = [24, 0], sizes = [8, 32], strides = [1, 1]} : vector<32x32xf32> to vector<8x32xf32>
    %cst_30 = arith.constant dense<0.000000e+00> : vector<8x32xf32>
    %83 = tpu.matmul %81, %82, %cst_30 {dimension_numbers = #tpu.dot_dimension_numbers<[1], [0], [0], [1], [0, 0, 1, 1], [], []>} : vector<8x8xf32>, vector<8x32xf32>, vector<8x32xf32> -> vector<8x32xf32>
    %84 = arith.addf %65, %83 : vector<8x32xf32>
    %c0_31 = arith.constant 0 : index
    %c0_32 = arith.constant 0 : index
    %85 = vector.load %arg6[%c0_31, %c0_32] : memref<1x32xf32, #tpu.memory_space<vmem>>, vector<1x32xf32>
    %86 = vector.broadcast %85 : vector<1x32xf32> to vector<8x32xf32>
    %87 = arith.addf %84, %86 : vector<8x32xf32>
    %c0_33 = arith.constant 0 : index
    %c0_34 = arith.constant 0 : index
    %c0_35 = arith.constant 0 : index
    %88 = vector.load %arg4[%c0_33, %c0_34, %c0_35] : memref<1x8x32xf32, #tpu.memory_space<vmem>>, vector<1x8x32xf32>
    %89 = vector.shape_cast %88 : vector<1x8x32xf32> to vector<8x32xf32>
    %90 = arith.addf %87, %89 : vector<8x32xf32>
    %c0_36 = arith.constant 0 : index
    %c0_37 = arith.constant 0 : index
    %91 = vector.load %arg7[%c0_36, %c0_37] : memref<1x32xf32, #tpu.memory_space<vmem>>, vector<1x32xf32>
    %c0_38 = arith.constant 0 : index
    %c0_39 = arith.constant 0 : index
    %92 = vector.load %arg8[%c0_38, %c0_39] : memref<1x32xf32, #tpu.memory_space<vmem>>, vector<1x32xf32>
    %cst_40 = arith.constant dense<0.000000e+00> : vector<8xf32>
    %93 = vector.multi_reduction <add>, %90, %cst_40 [1] : vector<8x32xf32> to vector<8xf32>
    %94 = vector.shape_cast %93 : vector<8xf32> to vector<8x1xf32>
    %cst_41 = arith.constant 3.200000e+01 : f32
    %95 = vector.broadcast %cst_41 : f32 to vector<8x1xf32>
    %96 = arith.divf %94, %95 : vector<8x1xf32>
    %97 = vector.broadcast %96 : vector<8x1xf32> to vector<8x32xf32>
    %98 = arith.subf %90, %97 : vector<8x32xf32>
    %99 = arith.mulf %98, %98 : vector<8x32xf32>
    %cst_42 = arith.constant dense<0.000000e+00> : vector<8xf32>
    %100 = vector.multi_reduction <add>, %99, %cst_42 [1] : vector<8x32xf32> to vector<8xf32>
    %101 = vector.shape_cast %100 : vector<8xf32> to vector<8x1xf32>
    %cst_43 = arith.constant 3.200000e+01 : f32
    %102 = vector.broadcast %cst_43 : f32 to vector<8x1xf32>
    %103 = arith.divf %101, %102 : vector<8x1xf32>
    %cst_44 = arith.constant 9.99999974E-6 : f32
    %104 = vector.broadcast %cst_44 : f32 to vector<8x1xf32>
    %105 = arith.addf %103, %104 : vector<8x1xf32>
    %106 = math.rsqrt %105 : vector<8x1xf32>
    %107 = vector.broadcast %106 : vector<8x1xf32> to vector<8x32xf32>
    %108 = arith.mulf %98, %107 : vector<8x32xf32>
    %109 = vector.broadcast %91 : vector<1x32xf32> to vector<8x32xf32>
    %110 = arith.mulf %108, %109 : vector<8x32xf32>
    %111 = vector.broadcast %92 : vector<1x32xf32> to vector<8x32xf32>
    %112 = arith.addf %110, %111 : vector<8x32xf32>
    %c0_45 = arith.constant 0 : index
    %c0_46 = arith.constant 0 : index
    %c0_47 = arith.constant 0 : index
    %113 = vector.load %arg9[%c0_45, %c0_46, %c0_47] : memref<1x8x32xf32, #tpu.memory_space<vmem>>, vector<1x8x32xf32>
    %114 = vector.shape_cast %113 : vector<1x8x32xf32> to vector<8x32xf32>
    %115 = vector.shape_cast %112 : vector<8x32xf32> to vector<1x8x32xf32>
    tpu.vector_store %arg9[%c0_45, %c0_46, %c0_47], %115 {strides = array<i32>} : memref<1x8x32xf32, #tpu.memory_space<vmem>>, vector<1x8x32xf32>,
    %cst_48 = arith.constant 2.500000e-01 : f32
    %116 = vector.broadcast %cst_48 : f32 to vector<8x16xf32>
    %117 = arith.mulf %80, %116 : vector<8x16xf32>
    %c0_49 = arith.constant 0 : index
    %c0_50 = arith.constant 0 : index
    %c0_51 = arith.constant 0 : index
    %118 = vector.load %arg10[%c0_49, %c0_50, %c0_51] : memref<1x8x16xf32, #tpu.memory_space<vmem>>, vector<1x8x16xf32>
    %119 = vector.shape_cast %118 : vector<1x8x16xf32> to vector<8x16xf32>
    %120 = vector.shape_cast %117 : vector<8x16xf32> to vector<1x8x16xf32>
    tpu.vector_store %arg10[%c0_49, %c0_50, %c0_51], %120 {strides = array<i32>} : memref<1x8x16xf32, #tpu.memory_space<vmem>>, vector<1x8x16xf32>,
    return
  }
  func.func @transform_0(%arg0: i32) -> (i32, i32, i32) {
    %c0_i32 = arith.constant 0 : i32
    %c0_i32_0 = arith.constant 0 : i32
    %c0_i32_1 = arith.constant 0 : i32
    return %arg0, %c0_i32, %c0_i32_0 : i32, i32, i32
  }
  func.func @transform_1(%arg0: i32) -> (i32, i32, i32) {
    %c0_i32 = arith.constant 0 : i32
    %c0_i32_0 = arith.constant 0 : i32
    %c0_i32_1 = arith.constant 0 : i32
    return %arg0, %c0_i32, %c0_i32_0 : i32, i32, i32
  }
  func.func @transform_2(%arg0: i32) -> (i32, i32, i32) {
    %c0_i32 = arith.constant 0 : i32
    %c0_i32_0 = arith.constant 0 : i32
    %c0_i32_1 = arith.constant 0 : i32
    return %arg0, %c0_i32, %c0_i32_0 : i32, i32, i32
  }
  func.func @transform_3(%arg0: i32) -> (i32, i32, i32) {
    %c0_i32 = arith.constant 0 : i32
    %c0_i32_0 = arith.constant 0 : i32
    %c0_i32_1 = arith.constant 0 : i32
    return %arg0, %c0_i32, %c0_i32_0 : i32, i32, i32
  }
  func.func @transform_4(%arg0: i32) -> (i32, i32) {
    %c0_i32 = arith.constant 0 : i32
    %c0_i32_0 = arith.constant 0 : i32
    %c0_i32_1 = arith.constant 0 : i32
    return %c0_i32, %c0_i32_0 : i32, i32
  }
  func.func @transform_5(%arg0: i32) -> (i32, i32) {
    %c0_i32 = arith.constant 0 : i32
    %c0_i32_0 = arith.constant 0 : i32
    %c0_i32_1 = arith.constant 0 : i32
    return %c0_i32, %c0_i32_0 : i32, i32
  }
  func.func @transform_6(%arg0: i32) -> (i32, i32) {
    %c0_i32 = arith.constant 0 : i32
    %c0_i32_0 = arith.constant 0 : i32
    %c0_i32_1 = arith.constant 0 : i32
    return %c0_i32, %c0_i32_0 : i32, i32
  }
  func.func @transform_7(%arg0: i32) -> (i32, i32) {
    %c0_i32 = arith.constant 0 : i32
    %c0_i32_0 = arith.constant 0 : i32
    %c0_i32_1 = arith.constant 0 : i32
    return %c0_i32, %c0_i32_0 : i32, i32
  }
  func.func @transform_8(%arg0: i32) -> (i32, i32, i32) {
    %c0_i32 = arith.constant 0 : i32
    %c0_i32_0 = arith.constant 0 : i32
    %c0_i32_1 = arith.constant 0 : i32
    return %arg0, %c0_i32, %c0_i32_0 : i32, i32, i32
  }
  func.func @transform_9(%arg0: i32) -> (i32, i32, i32) {
    %c0_i32 = arith.constant 0 : i32
    %c0_i32_0 = arith.constant 0 : i32
    %c0_i32_1 = arith.constant 0 : i32
    return %arg0, %c0_i32, %c0_i32_0 : i32, i32, i32
  }
}

module attributes {stable_mosaic.version = 11 : i64} {
  func.func @_ffn_norm3_kernel(%arg0: i32, %arg1: memref<16x32xf32, #tpu.memory_space<vmem>>, %arg2: memref<32x64xf32, #tpu.memory_space<vmem>>, %arg3: memref<1x64xf32, #tpu.memory_space<vmem>>, %arg4: memref<64x32xf32, #tpu.memory_space<vmem>>, %arg5: memref<1x32xf32, #tpu.memory_space<vmem>>, %arg6: memref<1x32xf32, #tpu.memory_space<vmem>>, %arg7: memref<1x32xf32, #tpu.memory_space<vmem>>, %arg8: memref<16x32xf32, #tpu.memory_space<vmem>>) attributes {dimension_semantics = [#tpu.dimension_semantics<parallel>], iteration_bounds = array<i64: 1>, scalar_prefetch = 0 : i64, scratch_operands = 0 : i64, tpu.core_type = #tpu.core_type<tc>, window_params = [{transform_indices = @transform_0, window_bounds = array<i64: 16, 32>}, {pipeline_mode = #tpu.pipeline_mode<synchronous>, transform_indices = @transform_1, window_bounds = array<i64: 32, 64>}, {pipeline_mode = #tpu.pipeline_mode<synchronous>, transform_indices = @transform_2, window_bounds = array<i64: 1, 64>}, {pipeline_mode = #tpu.pipeline_mode<synchronous>, transform_indices = @transform_3, window_bounds = array<i64: 64, 32>}, {pipeline_mode = #tpu.pipeline_mode<synchronous>, transform_indices = @transform_4, window_bounds = array<i64: 1, 32>}, {pipeline_mode = #tpu.pipeline_mode<synchronous>, transform_indices = @transform_5, window_bounds = array<i64: 1, 32>}, {pipeline_mode = #tpu.pipeline_mode<synchronous>, transform_indices = @transform_6, window_bounds = array<i64: 1, 32>}, {transform_indices = @transform_7, window_bounds = array<i64: 16, 32>}]} {
    %c0 = arith.constant 0 : index
    %c0_0 = arith.constant 0 : index
    %0 = vector.load %arg1[%c0, %c0_0] : memref<16x32xf32, #tpu.memory_space<vmem>>, vector<16x32xf32>
    %c0_1 = arith.constant 0 : index
    %c0_2 = arith.constant 0 : index
    %1 = vector.load %arg2[%c0_1, %c0_2] : memref<32x64xf32, #tpu.memory_space<vmem>>, vector<32x64xf32>
    %cst = arith.constant dense<0.000000e+00> : vector<16x64xf32>
    %2 = tpu.matmul %0, %1, %cst {dimension_numbers = #tpu.dot_dimension_numbers<[1], [0], [0], [1], [0, 0, 1, 1], [], []>} : vector<16x32xf32>, vector<32x64xf32>, vector<16x64xf32> -> vector<16x64xf32>
    %c0_3 = arith.constant 0 : index
    %c0_4 = arith.constant 0 : index
    %3 = vector.load %arg3[%c0_3, %c0_4] : memref<1x64xf32, #tpu.memory_space<vmem>>, vector<1x64xf32>
    %4 = vector.broadcast %3 : vector<1x64xf32> to vector<16x64xf32>
    %5 = arith.addf %2, %4 : vector<16x64xf32>
    %cst_5 = arith.constant 0.000000e+00 : f32
    %6 = vector.broadcast %cst_5 : f32 to vector<16x64xf32>
    %7 = arith.maximumf %5, %6 : vector<16x64xf32>
    %c0_6 = arith.constant 0 : index
    %c0_7 = arith.constant 0 : index
    %8 = vector.load %arg4[%c0_6, %c0_7] : memref<64x32xf32, #tpu.memory_space<vmem>>, vector<64x32xf32>
    %cst_8 = arith.constant dense<0.000000e+00> : vector<16x32xf32>
    %9 = tpu.matmul %7, %8, %cst_8 {dimension_numbers = #tpu.dot_dimension_numbers<[1], [0], [0], [1], [0, 0, 1, 1], [], []>} : vector<16x64xf32>, vector<64x32xf32>, vector<16x32xf32> -> vector<16x32xf32>
    %c0_9 = arith.constant 0 : index
    %c0_10 = arith.constant 0 : index
    %10 = vector.load %arg5[%c0_9, %c0_10] : memref<1x32xf32, #tpu.memory_space<vmem>>, vector<1x32xf32>
    %11 = vector.broadcast %10 : vector<1x32xf32> to vector<16x32xf32>
    %12 = arith.addf %9, %11 : vector<16x32xf32>
    %13 = arith.addf %0, %12 : vector<16x32xf32>
    %c0_11 = arith.constant 0 : index
    %c0_12 = arith.constant 0 : index
    %14 = vector.load %arg6[%c0_11, %c0_12] : memref<1x32xf32, #tpu.memory_space<vmem>>, vector<1x32xf32>
    %c0_13 = arith.constant 0 : index
    %c0_14 = arith.constant 0 : index
    %15 = vector.load %arg7[%c0_13, %c0_14] : memref<1x32xf32, #tpu.memory_space<vmem>>, vector<1x32xf32>
    %cst_15 = arith.constant dense<0.000000e+00> : vector<16xf32>
    %16 = vector.multi_reduction <add>, %13, %cst_15 [1] : vector<16x32xf32> to vector<16xf32>
    %17 = vector.shape_cast %16 : vector<16xf32> to vector<16x1xf32>
    %cst_16 = arith.constant 3.200000e+01 : f32
    %18 = vector.broadcast %cst_16 : f32 to vector<16x1xf32>
    %19 = arith.divf %17, %18 : vector<16x1xf32>
    %20 = vector.broadcast %19 : vector<16x1xf32> to vector<16x32xf32>
    %21 = arith.subf %13, %20 : vector<16x32xf32>
    %22 = arith.mulf %21, %21 : vector<16x32xf32>
    %cst_17 = arith.constant dense<0.000000e+00> : vector<16xf32>
    %23 = vector.multi_reduction <add>, %22, %cst_17 [1] : vector<16x32xf32> to vector<16xf32>
    %24 = vector.shape_cast %23 : vector<16xf32> to vector<16x1xf32>
    %cst_18 = arith.constant 3.200000e+01 : f32
    %25 = vector.broadcast %cst_18 : f32 to vector<16x1xf32>
    %26 = arith.divf %24, %25 : vector<16x1xf32>
    %cst_19 = arith.constant 9.99999974E-6 : f32
    %27 = vector.broadcast %cst_19 : f32 to vector<16x1xf32>
    %28 = arith.addf %26, %27 : vector<16x1xf32>
    %29 = math.rsqrt %28 : vector<16x1xf32>
    %30 = vector.broadcast %29 : vector<16x1xf32> to vector<16x32xf32>
    %31 = arith.mulf %21, %30 : vector<16x32xf32>
    %32 = vector.broadcast %14 : vector<1x32xf32> to vector<16x32xf32>
    %33 = arith.mulf %31, %32 : vector<16x32xf32>
    %34 = vector.broadcast %15 : vector<1x32xf32> to vector<16x32xf32>
    %35 = arith.addf %33, %34 : vector<16x32xf32>
    %c0_20 = arith.constant 0 : index
    %c0_21 = arith.constant 0 : index
    %36 = vector.load %arg8[%c0_20, %c0_21] : memref<16x32xf32, #tpu.memory_space<vmem>>, vector<16x32xf32>
    tpu.vector_store %arg8[%c0_20, %c0_21], %35 {strides = array<i32>} : memref<16x32xf32, #tpu.memory_space<vmem>>, vector<16x32xf32>,
    return
  }
  func.func @transform_0(%arg0: i32) -> (i32, i32) {
    %c0_i32 = arith.constant 0 : i32
    %c0_i32_0 = arith.constant 0 : i32
    return %arg0, %c0_i32 : i32, i32
  }
  func.func @transform_1(%arg0: i32) -> (i32, i32) {
    %c0_i32 = arith.constant 0 : i32
    %c0_i32_0 = arith.constant 0 : i32
    %c0_i32_1 = arith.constant 0 : i32
    return %c0_i32, %c0_i32_0 : i32, i32
  }
  func.func @transform_2(%arg0: i32) -> (i32, i32) {
    %c0_i32 = arith.constant 0 : i32
    %c0_i32_0 = arith.constant 0 : i32
    %c0_i32_1 = arith.constant 0 : i32
    return %c0_i32, %c0_i32_0 : i32, i32
  }
  func.func @transform_3(%arg0: i32) -> (i32, i32) {
    %c0_i32 = arith.constant 0 : i32
    %c0_i32_0 = arith.constant 0 : i32
    %c0_i32_1 = arith.constant 0 : i32
    return %c0_i32, %c0_i32_0 : i32, i32
  }
  func.func @transform_4(%arg0: i32) -> (i32, i32) {
    %c0_i32 = arith.constant 0 : i32
    %c0_i32_0 = arith.constant 0 : i32
    %c0_i32_1 = arith.constant 0 : i32
    return %c0_i32, %c0_i32_0 : i32, i32
  }
  func.func @transform_5(%arg0: i32) -> (i32, i32) {
    %c0_i32 = arith.constant 0 : i32
    %c0_i32_0 = arith.constant 0 : i32
    %c0_i32_1 = arith.constant 0 : i32
    return %c0_i32, %c0_i32_0 : i32, i32
  }
  func.func @transform_6(%arg0: i32) -> (i32, i32) {
    %c0_i32 = arith.constant 0 : i32
    %c0_i32_0 = arith.constant 0 : i32
    %c0_i32_1 = arith.constant 0 : i32
    return %c0_i32, %c0_i32_0 : i32, i32
  }
  func.func @transform_7(%arg0: i32) -> (i32, i32) {
    %c0_i32 = arith.constant 0 : i32
    %c0_i32_0 = arith.constant 0 : i32
    return %arg0, %c0_i32 : i32, i32
  }
}

module attributes {stable_mosaic.version = 11 : i64} {
  func.func @_kv_proj_kernel(%arg0: i32, %arg1: memref<32x32xf32, #tpu.memory_space<vmem>>, %arg2: memref<32x32xf32, #tpu.memory_space<vmem>>, %arg3: memref<32x32xf32, #tpu.memory_space<vmem>>, %arg4: memref<1x32xf32, #tpu.memory_space<vmem>>, %arg5: memref<32x32xf32, #tpu.memory_space<vmem>>, %arg6: memref<1x32xf32, #tpu.memory_space<vmem>>, %arg7: memref<32x32xf32, #tpu.memory_space<vmem>>, %arg8: memref<32x32xf32, #tpu.memory_space<vmem>>) attributes {dimension_semantics = [#tpu.dimension_semantics<parallel>], iteration_bounds = array<i64: 1>, scalar_prefetch = 0 : i64, scratch_operands = 0 : i64, tpu.core_type = #tpu.core_type<tc>, window_params = [{transform_indices = @transform_0, window_bounds = array<i64: 32, 32>}, {transform_indices = @transform_1, window_bounds = array<i64: 32, 32>}, {pipeline_mode = #tpu.pipeline_mode<synchronous>, transform_indices = @transform_2, window_bounds = array<i64: 32, 32>}, {pipeline_mode = #tpu.pipeline_mode<synchronous>, transform_indices = @transform_3, window_bounds = array<i64: 1, 32>}, {pipeline_mode = #tpu.pipeline_mode<synchronous>, transform_indices = @transform_4, window_bounds = array<i64: 32, 32>}, {pipeline_mode = #tpu.pipeline_mode<synchronous>, transform_indices = @transform_5, window_bounds = array<i64: 1, 32>}, {transform_indices = @transform_6, window_bounds = array<i64: 32, 32>}, {transform_indices = @transform_7, window_bounds = array<i64: 32, 32>}]} {
    %c0 = arith.constant 0 : index
    %c0_0 = arith.constant 0 : index
    %0 = vector.load %arg1[%c0, %c0_0] : memref<32x32xf32, #tpu.memory_space<vmem>>, vector<32x32xf32>
    %c0_1 = arith.constant 0 : index
    %c0_2 = arith.constant 0 : index
    %1 = vector.load %arg2[%c0_1, %c0_2] : memref<32x32xf32, #tpu.memory_space<vmem>>, vector<32x32xf32>
    %2 = arith.addf %0, %1 : vector<32x32xf32>
    %c0_3 = arith.constant 0 : index
    %c0_4 = arith.constant 0 : index
    %3 = vector.load %arg3[%c0_3, %c0_4] : memref<32x32xf32, #tpu.memory_space<vmem>>, vector<32x32xf32>
    %cst = arith.constant dense<0.000000e+00> : vector<32x32xf32>
    %4 = tpu.matmul %2, %3, %cst {dimension_numbers = #tpu.dot_dimension_numbers<[1], [0], [0], [1], [0, 0, 1, 1], [], []>} : vector<32x32xf32>, vector<32x32xf32>, vector<32x32xf32> -> vector<32x32xf32>
    %c0_5 = arith.constant 0 : index
    %c0_6 = arith.constant 0 : index
    %5 = vector.load %arg4[%c0_5, %c0_6] : memref<1x32xf32, #tpu.memory_space<vmem>>, vector<1x32xf32>
    %6 = vector.broadcast %5 : vector<1x32xf32> to vector<32x32xf32>
    %7 = arith.addf %4, %6 : vector<32x32xf32>
    %c0_7 = arith.constant 0 : index
    %c0_8 = arith.constant 0 : index
    %8 = vector.load %arg5[%c0_7, %c0_8] : memref<32x32xf32, #tpu.memory_space<vmem>>, vector<32x32xf32>
    %cst_9 = arith.constant dense<0.000000e+00> : vector<32x32xf32>
    %9 = tpu.matmul %0, %8, %cst_9 {dimension_numbers = #tpu.dot_dimension_numbers<[1], [0], [0], [1], [0, 0, 1, 1], [], []>} : vector<32x32xf32>, vector<32x32xf32>, vector<32x32xf32> -> vector<32x32xf32>
    %c0_10 = arith.constant 0 : index
    %c0_11 = arith.constant 0 : index
    %10 = vector.load %arg6[%c0_10, %c0_11] : memref<1x32xf32, #tpu.memory_space<vmem>>, vector<1x32xf32>
    %11 = vector.broadcast %10 : vector<1x32xf32> to vector<32x32xf32>
    %12 = arith.addf %9, %11 : vector<32x32xf32>
    %c0_12 = arith.constant 0 : index
    %c0_13 = arith.constant 0 : index
    %13 = vector.load %arg7[%c0_12, %c0_13] : memref<32x32xf32, #tpu.memory_space<vmem>>, vector<32x32xf32>
    tpu.vector_store %arg7[%c0_12, %c0_13], %7 {strides = array<i32>} : memref<32x32xf32, #tpu.memory_space<vmem>>, vector<32x32xf32>,
    %c0_14 = arith.constant 0 : index
    %c0_15 = arith.constant 0 : index
    %14 = vector.load %arg8[%c0_14, %c0_15] : memref<32x32xf32, #tpu.memory_space<vmem>>, vector<32x32xf32>
    tpu.vector_store %arg8[%c0_14, %c0_15], %12 {strides = array<i32>} : memref<32x32xf32, #tpu.memory_space<vmem>>, vector<32x32xf32>,
    return
  }
  func.func @transform_0(%arg0: i32) -> (i32, i32) {
    %c0_i32 = arith.constant 0 : i32
    %c0_i32_0 = arith.constant 0 : i32
    return %arg0, %c0_i32 : i32, i32
  }
  func.func @transform_1(%arg0: i32) -> (i32, i32) {
    %c0_i32 = arith.constant 0 : i32
    %c0_i32_0 = arith.constant 0 : i32
    return %arg0, %c0_i32 : i32, i32
  }
  func.func @transform_2(%arg0: i32) -> (i32, i32) {
    %c0_i32 = arith.constant 0 : i32
    %c0_i32_0 = arith.constant 0 : i32
    %c0_i32_1 = arith.constant 0 : i32
    return %c0_i32, %c0_i32_0 : i32, i32
  }
  func.func @transform_3(%arg0: i32) -> (i32, i32) {
    %c0_i32 = arith.constant 0 : i32
    %c0_i32_0 = arith.constant 0 : i32
    %c0_i32_1 = arith.constant 0 : i32
    return %c0_i32, %c0_i32_0 : i32, i32
  }
  func.func @transform_4(%arg0: i32) -> (i32, i32) {
    %c0_i32 = arith.constant 0 : i32
    %c0_i32_0 = arith.constant 0 : i32
    %c0_i32_1 = arith.constant 0 : i32
    return %c0_i32, %c0_i32_0 : i32, i32
  }
  func.func @transform_5(%arg0: i32) -> (i32, i32) {
    %c0_i32 = arith.constant 0 : i32
    %c0_i32_0 = arith.constant 0 : i32
    %c0_i32_1 = arith.constant 0 : i32
    return %c0_i32, %c0_i32_0 : i32, i32
  }
  func.func @transform_6(%arg0: i32) -> (i32, i32) {
    %c0_i32 = arith.constant 0 : i32
    %c0_i32_0 = arith.constant 0 : i32
    return %arg0, %c0_i32 : i32, i32
  }
  func.func @transform_7(%arg0: i32) -> (i32, i32) {
    %c0_i32 = arith.constant 0 : i32
    %c0_i32_0 = arith.constant 0 : i32
    return %arg0, %c0_i32 : i32, i32
  }
}

</mosaic_0001>

<bundles_post_ra>
// kernel: tpu_custom_call.1
= control target key start
LH: loop header
LB: loop body
LE: loop exit
PB: predicated region body
PF: predicated region fallthrough
CT: control target
= control target key end

     0   :  { %7 = vsyncpa [#allocation3], 0  ;;  %s692_s0 = inlined_call_operand.hbm [shape: f32[8,128], index: 0, kind: input, shape index: {}]   ;;  %s693_s1 = inlined_call_operand.hbm [shape: f32[16,128], index: 1, kind: input, shape index: {}]   ;;  %s694_s2 = inlined_call_operand.hbm [shape: f32[16,128], index: 2, kind: output, shape index: {}]  }
   0x1   :  { %8 = vsyncpa [#allocation6], 0 }
   0x2   :  { %10 = vsyncpa [#allocation6 + $0x1], 0 }
   0x3   :  { %11 = vsyncpa [#allocation4], 0 }
   0x4   :  { %13 = vsyncpa [#allocation4 + $0x1], 0  ;;  %s491_s9 = smov 0   ;;  %s493_s10 = smov 0  }
   0x5   :  { %s495_s11 = smov 0   ;;  %s497_s12 = smov 0  }
   0x6 LB: > { %s512_s13 = sadd.s32 4294967295, %s471_s12   ;;  %s272_s14 = sadd.s32 4294967294, %s471_s12   ;;  %s471_s12 = sphi %s497_s12, %s718_s12   ;;  %s467_s11 = sphi %s495_s11, %s717_s11   ;;  %s463_s10 = sphi %s493_s10, %s716_s10   ;;  %s459_s9 = sphi %s491_s9, %s715_s9  }
   0x7   : > { %p60_p0 = scmp.ne.s32.totalorder %s463_s10, %s459_s9  ;;  %p695_p1 = scmp.eq.s32.totalorder %s512_s13, 0 }
   0x8   : > { %p90_p3 = scmp.eq.s32.totalorder %s272_s14, 1  ;;  %p273_p5 = scmp.ge.s32.totalorder %s471_s12, 1 }
   0x9   : > { %p521_p4 = por %p695_p1, %p60_p0  ;;  %p97_p7 = scmp.lt.s32.totalorder %s471_s12, 3 }
   0xa   : > { %p526_p6 = por %p90_p3, %p60_p0  ;;  %s473_s18 = smov [#allocation2]  }
   0xb   : > { %s698_s15 = scalar_select %p521_p4, 1, 0 }
   0xc   : > { %s699_s16 = scalar_select %p526_p6, 1, 0 }
   0xd   : > { %p531_p8 = pnand %p273_p5, %p97_p7  ;;  %s110_s19 = sshll.u32 %s473_s18, 4  ;;  %s111_s19 = int_to_ptr.vmem [resolvable:$true] %s110_s19 }
   0xe   : > { %s539_s20 = sadd.s32 1, %s471_s12   ;;  %s47_s24 = sadd.s32 1, %s467_s11 }
   0xf   : > { %s700_s17 = scalar_select %p531_p8, 1, 0 }
  0x10   : > { %p294_p10 = pneg %p531_p8  ;;  %s44_s22 = ssub.s32 %s471_s12, %s539_s20 }
  0x11   : > { %p549_p12 = scmp.eq.s32.totalorder %s44_s22, 0  ;;  %s343_s27 = scalar_lea.hbm %s692_s0, 128 }
  0x12   : > { %p543_p11 = pnand %p294_p10, %p695_p1  ;;  %p344_p0 = scmp.ne.s32.totalorder %s692_s0, %s343_s27 }
  0x13   : > { %s702_s23 = scalar_select %p549_p12, 1, 0 }
  0x14   : > { %p345_p3 = pneg %p543_p11  ;;  %p350_p10 = scmp.lt.u32.totalorder %s343_s27, %s692_s0 }
  0x16   : > { %p346_p5 = pnand %p345_p3, %p344_p0 }
  0x18   : > { %p347_p7 = pneg %p346_p5 }
  0x1a   : > { %p352_p9 = pnand %p350_p10, %p347_p7 }
  0x1c   : > { %355 = shalt.err (!%p352_p9)
}
  0x1d   : > { %s356_s4 = scalar_lea.vmem %s111_s19, 128  ;;  %p364_p6 = scmp.lt.s32.totalorder %s111_s19, %s111_s19 }
  0x1e   : > { %p357_p1 = scmp.ne.s32.totalorder %s111_s19, %s356_s4  ;;  %p365_p4 = scmp.lt.s32.totalorder %s356_s4, %s356_s4 }
  0x20   : > { %p359_p2 = pnand %p357_p1, %p345_p3  ;;  %p366_p8 = por %p365_p4, %p364_p6 }
  0x22   : > { %p360_p13 = pneg %p359_p2 }
  0x24   : > { %p367_p12 = pnand %p366_p8, %p360_p13 }
  0x26   : > { %370 = shalt.err (!%p367_p12)
}
  0x27   : > { %297 = dma.hbm_to_vmem [thread:$0]  (!%p543_p11), %s692_s0, 128, %s111_s19, [#allocation3]  }
  0x28   : > { %p703_p1 = scmp.ne.s32.totalorder %s702_s23, 0  ;;  %p55_p2 = scmp.eq.s32.totalorder %s471_s12, 0 }
  0x29   : > { %p704_p4 = scmp.ne.s32.totalorder %s467_s11, %s463_s10  ;;  %p705_p6 = scmp.eq.s32.totalorder %s512_s13, 1 }
  0x2a   : > { %s575_s7 = scalar_select %p703_p1, %s467_s11, %s47_s24  }
  0x2b   : > { %p583_p8 = por %p705_p6, %p704_p4  ;;  %p307_p9 = scmp.lt.s32.totalorder %s471_s12, 2 }
  0x2c   : > { %s121_s14 = sand.u32 1, %s467_s11   ;;  %p707_p12 = pmov %p704_p4 }
  0x2d   : > { %s276_s18 = sshll.u32 %s121_s14, 3  ;;  %s277_s21 = sshll.u32 %s471_s12, 7 }
  0x2e   : > { %p56_p13 = por %p55_p2, %p707_p12  ;;  %s596_s19 = scalar_lea.hbm %s693_s1, %s277_s21 }
  0x2f   : > { %s125_s23 = scalar_lea.vmem [#allocation5], %s276_s18  ;;  %s122_s27 = scalar_lea.sflag [#allocation6], %s121_s14 }
  0x30   : > { %s132_s24 = sshll.u32 %s125_s23, 4  ;;  %p598_p11 = pnand %p307_p9, %p56_p13  ;;  %s602_s24 = int_to_ptr.vmem [resolvable:$true] %s132_s24 }
  0x31   : > { %s371_s28 = scalar_lea.hbm %s596_s19, 128  ;;  %s376_s3 = scalar_lea.hbm %s693_s1, 256 }
  0x32   : > { %p372_p0 = scmp.ne.s32.totalorder %s596_s19, %s371_s28  ;;  %p373_p3 = pneg %p598_p11 }
  0x33   : > { %p377_p10 = scmp.lt.u32.totalorder %s596_s19, %s693_s1  ;;  %p378_p1 = scmp.lt.u32.totalorder %s376_s3, %s371_s28 }
  0x34   : > { %p374_p5 = pnand %p373_p3, %p372_p0  ;;  %p380_p4 = scmp.lt.u32.totalorder %s371_s28, %s596_s19 }
  0x35   : > { %p379_p2 = por %p378_p1, %p377_p10 }
  0x36   : > { %p375_p7 = pneg %p374_p5 }
  0x37   : > { %p381_p6 = por %p380_p4, %p379_p2 }
  0x39   : > { %p382_p9 = pnand %p381_p6, %p375_p7 }
  0x3b   : > { %385 = shalt.err (!%p382_p9)
}
  0x3c   : > { %s386_s6 = scalar_lea.vmem %s602_s24, 128  ;;  %s474_s14 = smov [#allocation5]  }
  0x3d   : > { %p387_p12 = scmp.ne.s32.totalorder %s602_s24, %s386_s6  ;;  %s391_s18 = sshll.u32 %s474_s14, 4  ;;  %s392_s18 = int_to_ptr.vmem [resolvable:$false] %s391_s18 }
  0x3e   : > { %s393_s21 = scalar_lea.vmem %s392_s18, 256  ;;  %p394_p5 = scmp.lt.s32.totalorder %s602_s24, %s392_s18 }
  0x3f   : > { %p389_p13 = pnand %p387_p12, %p373_p3  ;;  %p395_p10 = scmp.lt.s32.totalorder %s393_s21, %s386_s6 }
  0x41   : > { %p390_p0 = pneg %p389_p13  ;;  %p396_p1 = por %p395_p10, %p394_p5 }
  0x43   : > { %p397_p2 = pnand %p396_p1, %p390_p0 }
  0x45   : > { %400 = shalt.err (!%p397_p2)
}
  0x46   : > { %301 = dma.hbm_to_vmem [thread:$0]  (!%p598_p11), %s596_s19, 128, %s602_s24, %s122_s27  }
  0x47   : > { %p709_p7 = scmp.ne.s32.totalorder %s700_s17, 0 }
  0x48   : > { %p710_p3 = scmp.eq.s32.totalorder (!%p709_p7), %s512_s13, 0 }
  0x49   : > { %141 = sbr.rel (%p709_p7) target bundleno = 110 (0x6e), region = 28 }
  0x50   : > { %446 = dma.done.wait (%p710_p3), [#allocation3], 128   ;;  %p711_p4 = pmov %p710_p3 }
  0x51   : > { %s636_s22 = sand.u32 1, %s463_s10   ;;  %p712_p6 = scmp.ne.s32.totalorder %s698_s15, 0 }
  0x52   : > { %448 = vsyncadd (%p711_p4), [#allocation3], 4294967168  ;;  %s280_s25 = sshll.u32 %s636_s22, 3  ;;  %s148_s23 = scalar_lea.sflag [#allocation6], %s636_s22 }
  0x53   : > { %s151_s26 = scalar_lea.vmem [#allocation5], %s280_s25 }
  0x54   : > { %450 = dma.done.wait (%p712_p6), %s148_s23, 128  }
  0x55   : > { %452 = vsyncadd (%p712_p6), %s148_s23, 4294967168  ;;  %s171_s17 = scalar_lea.vmem [#allocation7], %s280_s25  ;;  %s283_s24 = sshll.u32 %s512_s13, 7  ;;  %v172_v0 = vld [vmem:[%s151_s26] sm:$0xff]  ;;  %v173_v1 = vld [vmem:[#allocation2] sm:$0xff] }
  0x56   : > { %s190_s19 = sshll.u32 %s171_s17, 4  ;;  %v174_v2 = vadd.f32 %v173_v1, %v172_v0  ;;  %s650_s29 = scalar_lea.hbm %s694_s2, %s283_s24  ;;  %s645_s19 = int_to_ptr.vmem [resolvable:$true] %s190_s19 }
  0x57   : > { %s177_s15 = scalar_lea.sflag [#allocation4], %s636_s22  ;;  %s401_s30 = scalar_lea.vmem %s645_s19, 128 }
  0x58   : > { %175 = vst [vmem:[%s171_s17] sm:$0xff] %v174_v2  ;;  %p402_p11 = scmp.ne.s32.totalorder %s645_s19, %s401_s30  ;;  %s475_s13 = smov [#allocation7]  }
  0x59   : > { %s405_s3 = sshll.u32 %s475_s13, 4  ;;  %s406_s3 = int_to_ptr.vmem [resolvable:$false] %s405_s3 }
  0x5a   : > { %p403_p9 = pnand %p402_p11, %p583_p8  ;;  %s407_s4 = scalar_lea.vmem %s406_s3, 256 }
  0x5b   : > { %p408_p13 = scmp.lt.s32.totalorder %s645_s19, %s406_s3  ;;  %p409_p0 = scmp.lt.s32.totalorder %s407_s4, %s401_s30 }
  0x5c   : > { %p404_p12 = pneg %p403_p9 }
  0x5d   : > { %p410_p5 = por %p409_p0, %p408_p13 }
  0x5f   : > { %p411_p10 = pnand %p410_p5, %p404_p12 }
  0x61   : > { %414 = shalt.err (!%p411_p10)
}
  0x62   : > { %s415_s5 = scalar_lea.hbm %s650_s29, 128  ;;  %s419_s18 = scalar_lea.hbm %s694_s2, 256 }
  0x63   : > { %p416_p1 = scmp.ne.s32.totalorder %s650_s29, %s415_s5  ;;  %p420_p3 = scmp.lt.u32.totalorder %s650_s29, %s694_s2 }
  0x64   : > { %p421_p4 = scmp.lt.u32.totalorder %s419_s18, %s415_s5  ;;  %p423_p11 = scmp.lt.u32.totalorder %s415_s5, %s650_s29 }
  0x65   : > { %p417_p2 = pnand %p416_p1, %p583_p8 }
  0x66   : > { %p422_p6 = por %p421_p4, %p420_p3 }
  0x67   : > { %p418_p7 = pneg %p417_p2 }
  0x68   : > { %p424_p9 = por %p423_p11, %p422_p6 }
  0x6a   : > { %p425_p12 = pnand %p424_p9, %p418_p7 }
  0x6c   : > { %428 = shalt.err (!%p425_p12)
}
  0x6d   : > { %292 = dma.vmem_to_hbm [thread:$0]  (%p583_p8), %s645_s19, 128, %s650_s29, %s177_s15  }
  0x6e PF: > { %s202_s25 = sand.u32 1, %s459_s9   ;;  %p713_p13 = scmp.ne.s32.totalorder %s699_s16, 0 }
  0x6f   : > { %p714_p0 = scmp.ge.s32.totalorder %s471_s12, 2  ;;  %s203_s23 = scalar_lea.sflag [#allocation4], %s202_s25 }
  0x71   : > { %p303_p5 = pnand %p714_p0, %p713_p13 }
  0x73   : > { %454 = dma.done.wait (!%p303_p5), %s203_s23, 128  }
  0x74   : > { %456 = vsyncadd (!%p303_p5), %s203_s23, 4294967168  ;;  %p16_p10 = scmp.ge.s32.totalorder %s539_s20, 4   ;;  %s715_s9 = smov %s463_s10 }
  0x75   : > { %s716_s10 = smov %s467_s11  ;;  %s717_s11 = smov %s575_s7 }
  0x76   : > { %s718_s12 = smov %s539_s20  ;;  %18 = sbr.rel (!%p16_p10) target bundleno = 6 (0x6), region = 78 }
  0x7d   :  { %208 = vsyncpa [#allocation3], 1 }
  0x7e   :  { %210 = vsyncpa [#allocation3 + $0x1], 1 }
  0x7f   :  { %211 = vsyncpa [#allocation6], 1 }
  0x80   :  { %213 = vsyncpa [#allocation6 + $0x1], 1 }
  0x81   :  { %214 = vsyncpa [#allocation4], 1 }
  0x82   :  { %216 = vsyncpa [#allocation4 + $0x1], 1 }

// kernel: transformer_decoder_layer.4
= control target key start
LH: loop header
LB: loop body
LE: loop exit
PB: predicated region body
PF: predicated region fallthrough
CT: control target
= control target key end

     0   :  { %vm29_vm0 = vcmask 261120   ;;  %s310_s0 = inlined_call_operand.vmem [shape: f32[16,32], index: 0, kind: input, shape index: {}]   ;;  %s311_s4 = inlined_call_operand.vmem [shape: f32[32,32], index: 4, kind: input, shape index: {}]   ;;  %s312_s2 = inlined_call_operand.vmem [shape: f32[1,32], index: 2, kind: input, shape index: {}]   ;;  %s313_s3 = inlined_call_operand.vmem [shape: f32[1,32], index: 3, kind: input, shape index: {}]   ;;  %s314_s1 = inlined_call_operand.vmem [shape: f32[16,32], index: 1, kind: input, shape index: {}]   ;;  %s315_s6 = inlined_call_operand.vmem [shape: f32[16,32], index: 6, kind: output, shape index: {0}]   ;;  %s316_s5 = inlined_call_operand.vmem [shape: f32[1,32], index: 5, kind: input, shape index: {}]   ;;  %s317_s7 = inlined_call_operand.vmem [shape: f32[16,32], index: 7, kind: output, shape index: {1}]  }
   0x1   :  { %v25_v0 = vld [vmem:[%s310_s0] sm:$0xff]  ;;  %v26_v1 = vld [vmem:[%s310_s0 + $0x8] sm:$0xff]  ;;  %v81_v16 = vld [vmem:[%s311_s4 + $0x10] sm:$0xff] }
   0x2   :  { %v30_v2 = vsel %vm29_vm0, %v25_v0, 0.0  ;;  %v33_v3 = vsel %vm29_vm0, %v26_v1, 0.0  ;;  %v79_v14 = vld [vmem:[%s311_s4] sm:$0xff]  ;;  %v80_v15 = vld [vmem:[%s311_s4 + $0x8] sm:$0xff]  ;;  %v82_v18 = vld [vmem:[%s311_s4 + $0x18] sm:$0xff] }
   0x3   :  { %31 = vadd.xlane.f32.xlu0 %v30_v2  ;;  %v203_v17 = vpack.c.bf16 %v80_v15, %v79_v14  ;;  %v207_v19 = vpack.c.bf16 %v82_v18, %v81_v16  ;;  %v181_v27 = vld [vmem:[%s312_s2] ss:$0 sm:$0xff]  ;;  %v76_v37 = vld [vmem:[%s314_s1 + $0x8] sm:$0xff] }
   0x4   :  { %v182_v29 = vld [vmem:[%s313_s3] ss:$0 sm:$0xff] }
   0x5   :  { %204 = vmatprep.subr.bf16.mxu0 %v203_v17  ;;  %v75_v32 = vld [vmem:[%s314_s1] sm:$0xff] }
   0x6   :  { %206 = vmatpush3.bf16.msra.mxu0 %v203_v17  ;;  %v183_v40 = vld [vmem:[%s316_s5] ss:$0 sm:$0xff] }
   0x7   :  { %34 = vadd.xlane.f32.xlu0 %v33_v3  ;;  %208 = vmatprep.subr.bf16.mxu0 %v207_v19 }
   0xa   :  { %210 = vmatpush3.bf16.msra.mxu0 %v207_v19 }
  0x90   :  { %v32_v4 = vpop.xlane.xlu0 %31 }
  0x91   :  { %v37_v5 = vmul.f32 0.03125, %v32_v4 }
  0x93   :  { %v39_v6 = vsub.f32 %v25_v0, %v37_v5 }
  0x94   :  { %v35_v7 = vpop.xlane.xlu0 %34 }
  0x95   :  { %v38_v8 = vmul.f32 0.03125, %v35_v7  ;;  %v41_v9 = vmul.f32 %v39_v6, %v39_v6 }
  0x97   :  { %v40_v10 = vsub.f32 %v26_v1, %v38_v8  ;;  %v43_v11 = vsel %vm29_vm0, %v41_v9, 0.0 }
  0x98   :  { %44 = vadd.xlane.f32.xlu1 %v43_v11 }
  0x99   :  { %v42_v12 = vmul.f32 %v40_v10, %v40_v10 }
  0x9b   :  { %v46_v13 = vsel %vm29_vm0, %v42_v12, 0.0 }
  0x9c   :  { %47 = vadd.xlane.f32.xlu1 %v46_v13 }
 0x125   :  { %v45_v20 = vpop.xlane.xlu1 %44 }
 0x126   :  { %v49_v21 = vmul.f32 0.03125, %v45_v20 }
 0x128   :  { %v51_v22 = vadd.f32 1e-05, %v49_v21 }
 0x129   :  { %v48_v23 = vpop.xlane.xlu1 %47 }
 0x12a   :  { %211 = vrsqrt.f32 %v51_v22  ;;  %v50_v24 = vmul.f32 0.03125, %v48_v23 }
 0x12c   :  { %v52_v25 = vadd.f32 1e-05, %v50_v24 }
 0x12e   :  { %213 = vrsqrt.f32 %v52_v25 }
 0x134   :  { %v212_v26 = vpop.eup %211 }
 0x135   :  { %v55_v28 = vmul.f32 %v212_v26, %v39_v6 }
 0x137   :  { %v63_v30 = vmul.f32 %v181_v27, %v55_v28 }
 0x138   :  { %v214_v31 = vpop.eup %213 }
 0x139   :  { %v56_v33 = vmul.f32 %v214_v31, %v40_v10  ;;  %v71_v34 = vadd.f32 %v182_v29, %v63_v30 }
 0x13b   :  { %v64_v35 = vmul.f32 %v181_v27, %v56_v33  ;;  %73 = vst.msk [vmem:[%s315_s6] sm:$0xff] %vm29_vm0, %v71_v34  ;;  %v77_v36 = vadd.f32 %v75_v32, %v71_v34 }
 0x13d   :  { %v72_v38 = vadd.f32 %v182_v29, %v64_v35  ;;  %200 = vmatprep.mubr.msk.f32.mxu0 %vm29_vm0, %v77_v36 }
 0x13f   :  { %74 = vst.msk [vmem:[%s315_s6 + $0x8] sm:$0xff] %vm29_vm0, %v72_v38  ;;  %v78_v39 = vadd.f32 %v76_v37, %v72_v38 }
 0x141   :  { %201 = vmatmul.mubr.msk.f32.vlgmr.msra.gmra.mrb[0].mxu0 %vm29_vm0, %v78_v39 }
 0x214   :  { %v202_v41 = vpop.f32.mrb[0].mxu0 }
 0x215   :  { %v168_v42 = vadd.f32 %v202_v41, %v183_v40  ;;  %v162_v43 = vpop.f32.mrb[1].mxu0 }
 0x216   :  { %v163_v44 = vadd.f32 %v183_v40, %v162_v43 }
 0x217   :  { %172 = vst.msk [vmem:[%s317_s7 + $0x8] sm:$0xff] %vm29_vm0, %v168_v42 }
 0x218   :  { %171 = vst.msk [vmem:[%s317_s7] sm:$0xff] %vm29_vm0, %v163_v44 }

// kernel: transformer_decoder_layer.5
= control target key start
LH: loop header
LB: loop body
LE: loop exit
PB: predicated region body
PF: predicated region fallthrough
CT: control target
= control target key end

     0   :  { %vm48_vm0 = vcmask 261120   ;;  %s474_s2 = inlined_call_operand.vmem [shape: f32[32,32], index: 2, kind: input, shape index: {}]   ;;  %s475_s4 = inlined_call_operand.vmem [shape: f32[32,32], index: 4, kind: input, shape index: {}]   ;;  %s476_s0 = inlined_call_operand.vmem [shape: f32[32,32], index: 0, kind: input, shape index: {}]   ;;  %s477_s1 = inlined_call_operand.vmem [shape: f32[32,32], index: 1, kind: input, shape index: {}]   ;;  %s478_s3 = inlined_call_operand.vmem [shape: f32[1,32], index: 3, kind: input, shape index: {}]   ;;  %s479_s5 = inlined_call_operand.vmem [shape: f32[1,32], index: 5, kind: input, shape index: {}]   ;;  %s480_s6 = inlined_call_operand.vmem [shape: f32[32,32], index: 6, kind: output, shape index: {0}]   ;;  %s481_s7 = inlined_call_operand.vmem [shape: f32[32,32], index: 7, kind: output, shape index: {1}]  }
   0x1   :  { %v37_v0 = vld [vmem:[%s474_s2] sm:$0xff]  ;;  %v38_v1 = vld [vmem:[%s474_s2 + $0x8] sm:$0xff]  ;;  %v39_v5 = vld [vmem:[%s474_s2 + $0x10] sm:$0xff] }
   0x2   :  { %v146_v2 = vld [vmem:[%s475_s4] sm:$0xff]  ;;  %v324_v3 = vpack.c.bf16 %v38_v1, %v37_v0  ;;  %v147_v4 = vld [vmem:[%s475_s4 + $0x8] sm:$0xff]  ;;  %v40_v6 = vld [vmem:[%s474_s2 + $0x18] sm:$0xff] }
   0x3   :  { %v332_v7 = vpack.c.bf16 %v147_v4, %v146_v2  ;;  %v328_v8 = vpack.c.bf16 %v40_v6, %v39_v5  ;;  %v148_v9 = vld [vmem:[%s475_s4 + $0x10] sm:$0xff]  ;;  %v149_v10 = vld [vmem:[%s475_s4 + $0x18] sm:$0xff]  ;;  %v25_v11 = vld [vmem:[%s476_s0] sm:$0xff] }
   0x4   :  { %325 = vmatprep.subr.bf16.mxu0 %v324_v3  ;;  %v336_v12 = vpack.c.bf16 %v149_v10, %v148_v9  ;;  %v29_v13 = vld [vmem:[%s477_s1] sm:$0xff]  ;;  %318 = vmatprep.mubr.msk.f32.mxu1 %vm48_vm0, %v25_v11  ;;  %v26_v15 = vld [vmem:[%s476_s0 + $0x8] sm:$0xff]  ;;  %v27_v17 = vld [vmem:[%s476_s0 + $0x10] sm:$0xff] }
   0x5   :  { %333 = vmatprep.subr.bf16.mxu1 %v332_v7  ;;  %327 = vmatpush3.bf16.msra.mxu0 %v324_v3  ;;  %v33_v14 = vadd.f32 %v29_v13, %v25_v11  ;;  %v30_v16 = vld [vmem:[%s477_s1 + $0x8] sm:$0xff]  ;;  %v31_v18 = vld [vmem:[%s477_s1 + $0x10] sm:$0xff]  ;;  %v28_v21 = vld [vmem:[%s476_s0 + $0x18] sm:$0xff] }
   0x6   :  { %335 = vmatpush3.bf16.msra.mxu1 %v332_v7  ;;  %329 = vmatprep.subr.bf16.mxu0 %v328_v8  ;;  %v34_v19 = vadd.f32 %v30_v16, %v26_v15  ;;  %v35_v20 = vadd.f32 %v31_v18, %v27_v17  ;;  %v32_v22 = vld [vmem:[%s477_s1 + $0x18] sm:$0xff]  ;;  %v270_v24 = vld [vmem:[%s478_s3] ss:$0 sm:$0xff] }
   0x7   :  { %337 = vmatprep.subr.bf16.mxu1 %v336_v12  ;;  %304 = vmatprep.mubr.msk.f32.mxu0 %vm48_vm0, %v33_v14  ;;  %v36_v23 = vadd.f32 %v32_v22, %v28_v21  ;;  %v275_v25 = vld [vmem:[%s479_s5] ss:$0 sm:$0xff] }
   0x9   :  { %331 = vmatpush3.bf16.msra.mxu0 %v328_v8 }
   0xa   :  { %339 = vmatpush3.bf16.msra.mxu1 %v336_v12 }
   0xc   :  { %305 = vmatmul.mubr.msk.f32.vlgmr.msra.gmra.mrb[0].mxu0 %vm48_vm0, %v34_v19 }
   0xd   :  { %319 = vmatmul.mubr.msk.f32.vlgmr.msra.gmra.mrb[0].mxu1 %vm48_vm0, %v26_v15  ;;  %307 = vmatprep.mubr.msk.f32.mxu0 %vm48_vm0, %v35_v20 }
   0xe   :  { %321 = vmatprep.mubr.msk.f32.mxu1 %vm48_vm0, %v27_v17 }
  0x10   :  { %308 = vmatmul.mubr.msk.f32.gmra.mrb[2].mxu0 %vm48_vm0, %v36_v23 }
  0x11   :  { %322 = vmatmul.mubr.msk.f32.gmra.mrb[2].mxu1 %vm48_vm0, %v28_v21 }
  0xdf   :  { %v306_v26 = vpop.f32.mrb[0].mxu0 }
  0xe0   :  { %v133_v27 = vadd.f32 %v306_v26, %v270_v24  ;;  %v320_v28 = vpop.f32.mrb[0].mxu1  ;;  %v127_v29 = vpop.f32.mrb[1].mxu0 }
  0xe1   :  { %v241_v30 = vadd.f32 %v320_v28, %v275_v25  ;;  %v128_v31 = vadd.f32 %v270_v24, %v127_v29  ;;  %v235_v32 = vpop.f32.mrb[1].mxu1 }
  0xe2   :  { %255 = vst.msk [vmem:[%s480_s6 + $0x8] sm:$0xff] %vm48_vm0, %v133_v27  ;;  %v236_v33 = vadd.f32 %v275_v25, %v235_v32 }
  0xe3   :  { %259 = vst.msk [vmem:[%s481_s7 + $0x8] sm:$0xff] %vm48_vm0, %v241_v30  ;;  %254 = vst.msk [vmem:[%s480_s6] sm:$0xff] %vm48_vm0, %v128_v31  ;;  %v309_v34 = vpop.f32.mrb[2].mxu0 }
  0xe4   :  { %258 = vst.msk [vmem:[%s481_s7] sm:$0xff] %vm48_vm0, %v236_v33  ;;  %v143_v35 = vadd.f32 %v309_v34, %v270_v24  ;;  %v323_v36 = vpop.f32.mrb[2].mxu1  ;;  %v137_v37 = vpop.f32.mrb[3].mxu0 }
  0xe5   :  { %v251_v38 = vadd.f32 %v323_v36, %v275_v25  ;;  %v138_v39 = vadd.f32 %v270_v24, %v137_v37  ;;  %v245_v40 = vpop.f32.mrb[3].mxu1 }
  0xe6   :  { %257 = vst.msk [vmem:[%s480_s6 + $0x18] sm:$0xff] %vm48_vm0, %v143_v35  ;;  %v246_v41 = vadd.f32 %v275_v25, %v245_v40 }
  0xe7   :  { %261 = vst.msk [vmem:[%s481_s7 + $0x18] sm:$0xff] %vm48_vm0, %v251_v38  ;;  %256 = vst.msk [vmem:[%s480_s6 + $0x10] sm:$0xff] %vm48_vm0, %v138_v39 }
  0xe8   :  { %260 = vst.msk [vmem:[%s481_s7 + $0x10] sm:$0xff] %vm48_vm0, %v246_v41 }

// kernel: transformer_decoder_layer.7
= control target key start
LH: loop header
LB: loop body
LE: loop exit
PB: predicated region body
PF: predicated region fallthrough
CT: control target
= control target key end

     0   :  { %vm39_vm0 = vcmask 261120   ;;  %vm138_vm1 = vcmask 523264   ;;  %s463_s1 = inlined_call_operand.vmem [shape: f32[32,64], index: 1, kind: input, shape index: {}]   ;;  %s464_s0 = inlined_call_operand.vmem [shape: f32[16,32], index: 0, kind: input, shape index: {}]   ;;  %s465_s3 = inlined_call_operand.vmem [shape: f32[64,32], index: 3, kind: input, shape index: {}]   ;;  %s466_s2 = inlined_call_operand.vmem [shape: f32[1,64], index: 2, kind: input, shape index: {}]   ;;  %s467_s4 = inlined_call_operand.vmem [shape: f32[1,32], index: 4, kind: input, shape index: {}]   ;;  %s468_s5 = inlined_call_operand.vmem [shape: f32[1,32], index: 5, kind: input, shape index: {}]   ;;  %s469_s6 = inlined_call_operand.vmem [shape: f32[1,32], index: 6, kind: input, shape index: {}]   ;;  %s470_s7 = inlined_call_operand.vmem [shape: f32[16,32], index: 7, kind: output, shape index: {}]  }
   0x1   :  { %v28_v0 = vld [vmem:[%s463_s1] sm:$0xff]  ;;  %v29_v1 = vld [vmem:[%s463_s1 + $0x8] sm:$0xff]  ;;  %v30_v2 = vld [vmem:[%s463_s1 + $0x10] sm:$0xff] }
   0x2   :  { %v327_v3 = vpack.c.bf16 %v29_v1, %v28_v0  ;;  %v31_v4 = vld [vmem:[%s463_s1 + $0x18] sm:$0xff]  ;;  %v26_v5 = vld [vmem:[%s464_s0] sm:$0xff]  ;;  %v124_v8 = vld [vmem:[%s465_s3 + $0x8] sm:$0xff] }
   0x3   :  { %v331_v6 = vpack.c.bf16 %v31_v4, %v30_v2  ;;  %305 = vmatprep.mubr.msk.f32.mxu0 %vm39_vm0, %v26_v5  ;;  %v123_v7 = vld [vmem:[%s465_s3] sm:$0xff]  ;;  %v125_v9 = vld [vmem:[%s465_s3 + $0x10] sm:$0xff]  ;;  %v126_v11 = vld [vmem:[%s465_s3 + $0x18] sm:$0xff] }
   0x4   :  { %328 = vmatprep.subr.bf16.mxu0 %v327_v3  ;;  %v335_v10 = vpack.c.bf16 %v124_v8, %v123_v7  ;;  %v339_v12 = vpack.c.bf16 %v126_v11, %v125_v9  ;;  %v127_v13 = vld [vmem:[%s465_s3 + $0x20] sm:$0xff]  ;;  %v128_v14 = vld [vmem:[%s465_s3 + $0x28] sm:$0xff]  ;;  %v129_v17 = vld [vmem:[%s465_s3 + $0x30] sm:$0xff] }
   0x5   :  { %330 = vmatpush3.bf16.msra.mxu0 %v327_v3  ;;  %v343_v15 = vpack.c.bf16 %v128_v14, %v127_v13  ;;  %v27_v16 = vld [vmem:[%s464_s0 + $0x8] sm:$0xff]  ;;  %v130_v18 = vld [vmem:[%s465_s3 + $0x38] sm:$0xff]  ;;  %v273_v20 = vld [vmem:[%s466_s2] ss:$0 sm:$0xff] }
   0x6   :  { %332 = vmatprep.subr.bf16.mxu0 %v331_v6  ;;  %336 = vmatprep.subr.bf16.mxu1 %v335_v10  ;;  %v347_v19 = vpack.c.bf16 %v130_v18, %v129_v17  ;;  %v276_v27 = vld [vmem:[%s467_s4] ss:$0 sm:$0xff] }
   0x7   :  { %338 = vmatpush3.bf16.msra.mxu1 %v335_v10  ;;  %v279_v53 = vld [vmem:[%s468_s5] ss:$0 sm:$0xff] }
   0x8   :  { %340 = vmatprep.subr.bf16.mxu1 %v339_v12  ;;  %v280_v55 = vld [vmem:[%s469_s6] ss:$0 sm:$0xff] }
   0x9   :  { %334 = vmatpush3.bf16.msra.mxu0 %v331_v6 }
   0xb   :  { %342 = vmatpush3.bf16.msra.mxu1 %v339_v12 }
   0xc   :  { %306 = vmatmul.mubr.msk.f32.vlgmr.msra.gmra.mrb[0].mxu0 %vm39_vm0, %v27_v16  ;;  %344 = vmatprep.subr.bf16.mxu1 %v343_v15 }
   0xf   :  { %346 = vmatpush3.bf16.msra.mxu1 %v343_v15 }
  0x10   :  { %348 = vmatprep.subr.bf16.mxu1 %v347_v19 }
  0x13   :  { %350 = vmatpush3.bf16.msra.mxu1 %v347_v19 }
  0xdf   :  { %v307_v21 = vpop.f32.mrb[0].mxu0 }
  0xe0   :  { %v118_v22 = vadd.f32 %v307_v21, %v273_v20  ;;  %v112_v23 = vpop.f32.mrb[1].mxu0 }
  0xe1   :  { %v113_v24 = vadd.f32 %v273_v20, %v112_v23 }
  0xe2   :  { %v122_v26 = vmax.f32 %v118_v22, 0.0 }
  0xe3   :  { %v121_v25 = vmax.f32 %v113_v24, 0.0 }
  0xe5   :  { %324 = vmatprep.mubr.msk.f32.mxu1 %vm138_vm1, %v121_v25 }
  0xe6   :  { %325 = vmatmul.mubr.msk.f32.vlgmr.msra.gmra.mrb[0].mxu1 %vm138_vm1, %v122_v26 }
 0x1b9   :  { %v326_v28 = vpop.f32.mrb[0].mxu1 }
 0x1ba   :  { %v211_v29 = vpop.f32.mrb[1].mxu1  ;;  %v217_v30 = vadd.f32 %v326_v28, %v276_v27 }
 0x1bb   :  { %v212_v31 = vadd.f32 %v276_v27, %v211_v29 }
 0x1bc   :  { %v221_v34 = vadd.f32 %v217_v30, %v27_v16 }
 0x1bd   :  { %v220_v32 = vadd.f32 %v212_v31, %v26_v5 }
 0x1be   :  { %v227_v35 = vsel %vm39_vm0, %v221_v34, 0.0 }
 0x1bf   :  { %v224_v33 = vsel %vm39_vm0, %v220_v32, 0.0 }
 0x1c0   :  { %225 = vadd.xlane.f32.xlu0 %v224_v33 }
 0x1c4   :  { %228 = vadd.xlane.f32.xlu0 %v227_v35 }
 0x24d   :  { %v226_v36 = vpop.xlane.xlu0 %225 }
 0x24e   :  { %v231_v37 = vmul.f32 0.03125, %v226_v36 }
 0x250   :  { %v233_v38 = vsub.f32 %v220_v32, %v231_v37 }
 0x251   :  { %v229_v39 = vpop.xlane.xlu0 %228 }
 0x252   :  { %v232_v40 = vmul.f32 0.03125, %v229_v39  ;;  %v235_v41 = vmul.f32 %v233_v38, %v233_v38 }
 0x254   :  { %v234_v42 = vsub.f32 %v221_v34, %v232_v40  ;;  %v237_v43 = vsel %vm39_vm0, %v235_v41, 0.0 }
 0x255   :  { %238 = vadd.xlane.f32.xlu1 %v237_v43 }
 0x256   :  { %v236_v44 = vmul.f32 %v234_v42, %v234_v42 }
 0x258   :  { %v240_v45 = vsel %vm39_vm0, %v236_v44, 0.0 }
 0x259   :  { %241 = vadd.xlane.f32.xlu1 %v240_v45 }
 0x2e2   :  { %v239_v46 = vpop.xlane.xlu1 %238 }
 0x2e3   :  { %v243_v47 = vmul.f32 0.03125, %v239_v46 }
 0x2e5   :  { %v245_v48 = vadd.f32 1e-05, %v243_v47 }
 0x2e6   :  { %v242_v49 = vpop.xlane.xlu1 %241 }
 0x2e7   :  { %351 = vrsqrt.f32 %v245_v48  ;;  %v244_v50 = vmul.f32 0.03125, %v242_v49 }
 0x2e9   :  { %v246_v51 = vadd.f32 1e-05, %v244_v50 }
 0x2eb   :  { %353 = vrsqrt.f32 %v246_v51 }
 0x2f1   :  { %v352_v52 = vpop.eup %351 }
 0x2f2   :  { %v249_v54 = vmul.f32 %v352_v52, %v233_v38 }
 0x2f4   :  { %v257_v56 = vmul.f32 %v279_v53, %v249_v54 }
 0x2f5   :  { %v354_v57 = vpop.eup %353 }
 0x2f6   :  { %v265_v58 = vadd.f32 %v280_v55, %v257_v56  ;;  %v250_v59 = vmul.f32 %v354_v57, %v234_v42 }
 0x2f8   :  { %267 = vst.msk [vmem:[%s470_s7] sm:$0xff] %vm39_vm0, %v265_v58  ;;  %v258_v60 = vmul.f32 %v279_v53, %v250_v59 }
 0x2fa   :  { %v266_v61 = vadd.f32 %v280_v55, %v258_v60 }
 0x2fc   :  { %268 = vst.msk [vmem:[%s470_s7 + $0x8] sm:$0xff] %vm39_vm0, %v266_v61 }

// kernel: transformer_decoder_layer.6
= control target key start
LH: loop header
LB: loop body
LE: loop exit
PB: predicated region body
PF: predicated region fallthrough
CT: control target
= control target key end

     0   :  { %s2222_s0 = inlined_call_operand.vmem [shape: f32[2,8,32], index: 0, kind: input, shape index: {}]   ;;  %s2223_s1 = inlined_call_operand.vmem [shape: f32[2,16,32], index: 1, kind: input, shape index: {}]   ;;  %s2224_s2 = inlined_call_operand.vmem [shape: f32[2,16,32], index: 2, kind: input, shape index: {}]   ;;  %s2225_s3 = inlined_call_operand.vmem [shape: f32[2,8,32], index: 3, kind: input, shape index: {}]   ;;  %s2226_s4 = inlined_call_operand.vmem [shape: f32[32,32], index: 4, kind: input, shape index: {}]   ;;  %s2227_s5 = inlined_call_operand.vmem [shape: f32[1,32], index: 5, kind: input, shape index: {}]   ;;  %s2228_s6 = inlined_call_operand.vmem [shape: f32[1,32], index: 6, kind: input, shape index: {}]   ;;  %s2229_s7 = inlined_call_operand.vmem [shape: f32[1,32], index: 7, kind: input, shape index: {}]   ;;  %s2230_s8 = inlined_call_operand.vmem [shape: f32[2,8,32], index: 8, kind: output, shape index: {0}]   ;;  %s2231_s9 = inlined_call_operand.hbm [shape: f32[2,8,16], index: 9, kind: output, shape index: {1}]  }
   0x1   :  { %2232 = sst [smem:[#allocation5_spill]] %s2222_s0 }
   0x2   :  { %2233 = sst [smem:[#allocation6_spill]] %s2223_s1 }
   0x3   :  { %15 = vsyncpa [#allocation3], 0 }
   0x4   :  { %17 = vsyncpa [#allocation3 + $0x1], 0  ;;  %s1961_s30 = smov 0   ;;  %s1963_s10 = smov 0  }
   0x5   :  { %s1965_s11 = smov 0   ;;  %s1967_s12 = smov 0  }
   0x6 LB: > { %s1982_s13 = sadd.s32 4294967295, %s1902_s12   ;;  %s1570_s14 = sadd.s32 4294967294, %s1902_s12   ;;  %s1902_s12 = sphi %s1967_s12, %s2243_s12   ;;  %s1898_s11 = sphi %s1965_s11, %s2242_s11   ;;  %s1894_s10 = sphi %s1963_s10, %s2241_s10   ;;  %s1890_s30 = sphi %s1961_s30, %s2240_s30  }
   0x7   : > { %s1986_s15 = sadd.s32 1, %s1902_s12   ;;  %s244_s16 = sadd.s32 1, %s1898_s11 }
   0x8   : > { %s241_s17 = ssub.s32 %s1902_s12, %s1986_s15  ;;  %p254_p0 = scmp.ne.s32.totalorder %s1898_s11, %s1894_s10 }
   0x9   : > { %p242_p1 = scmp.eq.s32.totalorder %s241_s17, 0  ;;  %p255_p2 = scmp.eq.s32.totalorder %s1982_s13, 1 }
   0xa   : > { %p260_p3 = scmp.ne.s32.totalorder %s1894_s10, %s1890_s30  ;;  %p261_p4 = scmp.eq.s32.totalorder %s1570_s14, 1 }
   0xb   : > { %s1997_s18 = scalar_select %p242_p1, %s1898_s11, %s244_s16  }
   0xc   : > { %p1999_p5 = por %p255_p2, %p254_p0  ;;  %p2003_p6 = por %p261_p4, %p260_p3 }
   0xd   : > { %p1573_p7 = scmp.ge.s32.totalorder %s1902_s12, 1  ;;  %p321_p8 = scmp.lt.s32.totalorder %s1902_s12, 3 }
   0xf   : > { %p322_p9 = pnand %p1573_p7, %p321_p8 }
  0x10   : > { %p374_p10 = scmp.lt.s32.totalorder (!%p322_p9), %s1982_s13, 1  ;;  %v1904_v0 = vmov (!%p322_p9), 0.0|0.0   ;;  %vm1905_vm0 = vmmov (!%p322_p9), 0   ;;  %v1906_v1 = vmov (!%p322_p9), 0.0   ;;  %vm405_vm1 = vcmask (!%p322_p9), 64512   ;;  %s2236_s1 = sld [smem:[#allocation6_spill]] (!%p322_p9) }
  0x11   : > { %325 = sbr.rel (%p322_p9) target bundleno = 2804 (0xaf4), region = 52  ;;  %1719 = vmatprep.subr.bf16.mxu0 (!%p322_p9), %v1904_v0  ;;  %1647 = vmatprep.mubr.msk.f32.mxu0 (!%p322_p9), %vm1905_vm0, %v1906_v1  ;;  %vm2027_vm2 = vmpackc.low (!%p322_p9), %vm405_vm1, %vm405_vm1  ;;  %s2239_s0 = sld [smem:[#allocation5_spill]] (!%p322_p9)  ;;  %vm485_vm3 = vcmask (!%p322_p9), 130048   ;;  %v401_v27 = vld [vmem:[%s2226_s4] sm:$0xff] (!%p322_p9)  ;;  %v402_v48 = vld [vmem:[%s2226_s4 + $0x8] sm:$0xff] (!%p322_p9)  ;;  %vm1398_vm4 = vcmask (!%p322_p9), 261120  }
  0x12   : > { %1723 = vmatprep.subr.bf16.mxu1 (!%p322_p9), %v1904_v0  ;;  %1654 = vmatprep.mubr.msk.f32.mxu1 (!%p322_p9), %vm1905_vm0, %v1906_v1  ;;  %s1907_s14 = smov (!%p322_p9), 120   ;;  %s1908_s24 = smov (!%p322_p9), 112  }
  0x13   : > { %s1909_s28 = smov (!%p322_p9), 104   ;;  %s371_s16 = sand.u32 (!%p322_p9), 1, %s1894_s10  }
  0x14   : > { %s2140_s17 = sshll.u32 (!%p322_p9), %s371_s16, 3 }
  0x18   : > { %s2014_s21 = scalar_select %p374_p10, %s1982_s13, 1 }
  0x1a   : > { %s1609_s22 = sshll.u32 %s2014_s21, 4  ;;  %s2032_s26 = sshll.u32 %s2014_s21, 3 }
  0x1b   : > { %s382_s25 = scalar_lea.vmem %s2236_s1, %s1609_s22  ;;  %s377_s29 = scalar_lea.vmem %s2239_s0, %s2032_s26 }
  0x1c   : > { %v397_v2 = vld [vmem:[%s382_s25] sm:$0xff]  ;;  %v398_v3 = vld [vmem:[%s382_s25 + $0x8] sm:$0xff]  ;;  %s387_s23 = scalar_lea.vmem %s2224_s2, %s1609_s22  ;;  %s391_s27 = scalar_lea.vmem %s2225_s3, %s2032_s26 }
  0x1d   : > { %v1720_v5 = vpack.c.bf16 %v398_v3, %v397_v2  ;;  %v2041_v6 = vld [vmem:[%s377_s29] sm:$0xff]  ;;  %v2048_v10 = vpack.i.bf16 %v398_v3, %v397_v2  ;;  %v400_v17 = vld [vmem:[%s387_s23 + $0x8] sm:$0xff]  ;;  %s1910_s29 = smov [#allocation2]  }
  0x1e   : > { %v399_v16 = vld [vmem:[%s387_s23] sm:$0xff]  ;;  %s373_s23 = scalar_lea.vmem [#allocation2], %s2140_s17  ;;  %s1844_s0 = sshll.u32 %s1910_s29, 4  ;;  %s1845_s0 = int_to_ptr.vmem [resolvable:$false] %s1844_s0 }
  0x1f   : > { %1722 = vmatpush3.bf16.xpose.msk.msra.mxu0 %vm2027_vm2, %v1720_v5  ;;  %1793 = vrot.lane.b32.xlu1 %v2048_v10, %s1907_s14  ;;  %v1724_v18 = vpack.c.bf16 %v400_v17, %v399_v16  ;;  %v2081_v33 = vpack.i.bf16 %v400_v17, %v399_v16  ;;  %s1451_s21 = sshll.u32 %s373_s23, 4  ;;  %s1846_s1 = scalar_lea.vmem %s1845_s0, 256  ;;  %s1452_s21 = int_to_ptr.vmem [resolvable:$true] %s1451_s21 }
  0x20   : > { %1730 = vmatprep.subr.bf16.mxu0 %v1904_v0  ;;  %p1847_p0 = scmp.lt.s32.totalorder %s1452_s21, %s1845_s0 }
  0x21   : > { %1725 = vmatpush3.bf16.msra.mxu1 %v1724_v18 }
  0x22   : > { %1726 = vmatprep.subr.bf16.mxu1 %v1904_v0 }
  0x23   : > { %571 = vrot.lane.b32.xlu1 %v2041_v6, %s1907_s14 }
  0x26   : > { %1648 = vmatmul.mubr.msk.f32.vlgmr.msra.gmra.mrb[0].mxu0 %vm405_vm1, %v2041_v6 }
  0x27   : > { %1668 = vmatprep.mubr.msk.f32.mxu0 %vm1905_vm0, %v1906_v1 }
  0x91   : > { %v1794_v20 = vpop.permute.xlu1 %1793 }
  0x92   : > { %v1796_v21 = vunpack.i.h.bf16 %v1794_v20  ;;  %v1795_v22 = vunpack.i.l.bf16 %v1794_v20 }
  0x94   : > { %v1727_v24 = vpack.c.bf16 %v1796_v21, %v1795_v22 }
  0x95   : > { %v572_v26 = vpop.permute.xlu1 %571 }
  0xf9   : > { %v481_v7 = vpop.f32.mrb[0].mxu0 }
  0xfa   : > { %v1649_v8 = vpop.f32.mrb[1].mxu0  ;;  %v486_v9 = vsel %vm485_vm3, %v481_v7, -inf }
  0xfb   : > { %487 = vmax.xlane.f32.xlu0 %v486_v9 }
 0x188   : > { %v488_v11 = vpop.xlane.xlu0 %487 }
 0x189   : > { %v489_v12 = vsub.f32 %v481_v7, %v488_v11 }
 0x18b   : > { %v490_v13 = vmul.f32 1.442695, %v489_v12 }
 0x18d   : > { %1822 = vpow2.f32 %v490_v13 }
 0x197   : > { %v1823_v14 = vpop.eup %1822 }
 0x198   : > { %v492_v15 = vsel %vm485_vm3, %v1823_v14, 0.0 }
 0x199   : > { %493 = vadd.xlane.f32.xlu0 %v492_v15 }
 0x226   : > { %v494_v19 = vpop.xlane.xlu0 %493 }
 0x227   : > { %1824 = vrcp.f32 %v494_v19 }
 0x231   : > { %v1825_v23 = vpop.eup %1824 }
 0x232   : > { %v2061_v25 = vmul.f32 %v1825_v23, %v1823_v14 }
 0x234   : > { %1655 = vmatmul.mubr.msk.f32.vlgmr.msra.gmra.mrb[0].mxu1 %vm485_vm3, %v2061_v25 }
 0x235   : > { %1729 = vmatpush3.bf16.xpose.msk.msra.mxu1 %vm2027_vm2, %v1727_v24  ;;  %1661 = vmatprep.mubr.msk.f32.mxu1 %vm1905_vm0, %v1906_v1 }
 0x236   : > { %1676 = vmatprep.subr.mxu1 %v1906_v1 }
 0x23c   : > { %1662 = vmatmul.mubr.msk.f32.vlgmr.msra.gmra.mrb[2].mxu1 %vm405_vm1, %v572_v26 }
 0x23d   : > { %1678 = vmatprep.mubr.msk.f32.mxu1 %vm1905_vm0, %v1906_v1  ;;  %1677 = vmatpush3.msra.mxu1 %v401_v27 }
 0x23e   : > { %1737 = vmatprep.subr.bf16.mxu1 %v1904_v0 }
 0x307   : > { %v567_v28 = vpop.f32.mrb[0].mxu1 }
 0x308   : > { %v1656_v29 = vpop.f32.mrb[1].mxu1  ;;  %1679 = vmatmul.mubr.msk.f32.vlgmr.msra.gmra.mrb[4].mxu1 %vm405_vm1, %v567_v28  ;;  %v403_v28 = vld [vmem:[%s2226_s4 + $0x10] sm:$0xff] }
 0x309   : > { %1692 = vmatprep.mubr.msk.f32.mxu1 %vm1905_vm0, %v1906_v1 }
 0x30f   : > { %v649_v30 = vpop.f32.mrb[2].mxu1 }
 0x310   : > { %v1663_v31 = vpop.f32.mrb[3].mxu1  ;;  %v653_v32 = vsel %vm485_vm3, %v649_v30, -inf }
 0x311   : > { %654 = vmax.xlane.f32.xlu0 %v653_v32 }
 0x327   : > { %1798 = vrot.lane.b32.xlu0 %v2081_v33, %s1907_s14  ;;  %s1606_s14 = sshll.u32 %s1982_s13, 7 }
 0x328   : > { %s2173_s25 = scalar_lea.hbm %s2231_s9, %s1606_s14 }
 0x32b   : > { %1803 = vrot.lane.b32.xlu0 %v2048_v10, %s1908_s24 }
 0x32f   : > { %892 = vrot.lane.b32.xlu0 %v2041_v6, %s1908_s24 }
 0x333   : > { %1808 = vrot.lane.b32.xlu0 %v2048_v10, %s1909_s28 }
 0x39e   : > { %v655_v34 = vpop.xlane.xlu0 %654 }
 0x39f   : > { %v656_v35 = vsub.f32 %v649_v30, %v655_v34 }
 0x3a1   : > { %v657_v36 = vmul.f32 1.442695, %v656_v35 }
 0x3a2   : > { %v1799_v39 = vpop.permute.xlu0 %1798 }
 0x3a3   : > { %1826 = vpow2.f32 %v657_v36  ;;  %v1801_v40 = vunpack.i.h.bf16 %v1799_v39  ;;  %v1800_v41 = vunpack.i.l.bf16 %v1799_v39 }
 0x3a5   : > { %v1731_v42 = vpack.c.bf16 %v1801_v40, %v1800_v41 }
 0x3a6   : > { %v1804_v49 = vpop.permute.xlu0 %1803 }
 0x3a7   : > { %1732 = vmatpush3.bf16.msra.mxu0 %v1731_v42  ;;  %v1806_v50 = vunpack.i.h.bf16 %v1804_v49  ;;  %v1805_v51 = vunpack.i.l.bf16 %v1804_v49 }
 0x3a8   : > { %1671 = vmatprep.subr.mxu0 %v1906_v1 }
 0x3a9   : > { %v1734_v53 = vpack.c.bf16 %v1806_v50, %v1805_v51 }
 0x3aa   : > { %v893_v52 = vpop.permute.xlu0 %892 }
 0x3ad   : > { %v1827_v37 = vpop.eup %1826 }
 0x3ae   : > { %v659_v38 = vsel %vm485_vm3, %v1827_v37, 0.0  ;;  %v1809_v54 = vpop.permute.xlu0 %1808 }
 0x3af   : > { %660 = vadd.xlane.f32.xlu1 %v659_v38  ;;  %v1811_v57 = vunpack.i.h.bf16 %v1809_v54  ;;  %v1810_v58 = vunpack.i.l.bf16 %v1809_v54  ;;  %v404_v38 = vld [vmem:[%s2226_s4 + $0x18] sm:$0xff] }
 0x3b1   : > { %v1741_v59 = vpack.c.bf16 %v1811_v57, %v1810_v58 }
 0x3c0   : > { %1139 = vrot.lane.b32.xlu1 %v2041_v6, %s1909_s28 }
 0x3db   : > { %v888_v43 = vpop.f32.mrb[4].mxu1 }
 0x3dc   : > { %v1680_v44 = vpop.f32.mrb[5].mxu1 }
 0x43c   : > { %v661_v45 = vpop.xlane.xlu1 %660 }
 0x43d   : > { %1828 = vrcp.f32 %v661_v45 }
 0x440   : > { %v1140_v60 = vpop.permute.xlu1 %1139 }
 0x447   : > { %v1829_v46 = vpop.eup %1828 }
 0x448   : > { %v2091_v47 = vmul.f32 %v1829_v46, %v1827_v37 }
 0x44a   : > { %1669 = vmatmul.mubr.msk.f32.vlgmr.msra.gmra.mrb[2].mxu0 %vm485_vm3, %v2091_v47  ;;  %v664_v23 = vadd.f32 %v2091_v47, %v2061_v25  ;;  %v1394_v47 = vld [vmem:[%s391_s27] sm:$0xff]  ;;  %s1435_s27 = scalar_lea.sflag [#allocation3], %s371_s16 }
 0x44b   : > { %1672 = vmatpush3.msra.mxu0 %v402_v48  ;;  %1673 = vmatprep.mubr.msk.f32.mxu0 %vm1905_vm0, %v1906_v1 }
 0x44c   : > { %1733 = vmatprep.subr.bf16.mxu0 %v1904_v0 }
 0x51d   : > { %v742_v55 = vpop.f32.mrb[2].mxu0 }
 0x51e   : > { %v1670_v56 = vpop.f32.mrb[3].mxu0  ;;  %1674 = vmatmul.mubr.msk.f32.vlgmr.msra.gmra.mrb[4].mxu0 %vm405_vm1, %v742_v55 }
 0x51f   : > { %1736 = vmatpush3.bf16.xpose.msk.msra.mxu0 %vm2027_vm2, %v1734_v53  ;;  %1685 = vmatprep.mubr.msk.f32.mxu0 %vm1905_vm0, %v1906_v1 }
 0x520   : > { %1740 = vmatprep.subr.bf16.mxu0 %v1904_v0 }
 0x526   : > { %1686 = vmatmul.mubr.msk.f32.vlgmr.msra.gmra.mrb[6].mxu0 %vm405_vm1, %v893_v52 }
 0x527   : > { %1743 = vmatpush3.bf16.xpose.msk.msra.mxu0 %vm2027_vm2, %v1741_v59  ;;  %1704 = vmatprep.mubr.msk.f32.mxu0 %vm1905_vm0, %v1906_v1 }
 0x52e   : > { %1705 = vmatmul.mubr.msk.f32.vlgmr.msra.gmra.mrb[8].mxu0 %vm405_vm1, %v1140_v60 }
 0x5f1   : > { %v815_v61 = vpop.f32.mrb[4].mxu0 }
 0x5f2   : > { %v2117_v62 = vadd.f32 %v888_v43, %v815_v61  ;;  %v1675_v63 = vpop.f32.mrb[5].mxu0 }
 0x5f9   : > { %v970_v2 = vpop.f32.mrb[6].mxu0 }
 0x5fa   : > { %v1687_v3 = vpop.f32.mrb[7].mxu0  ;;  %v974_v5 = vsel %vm485_vm3, %v970_v2, -inf }
 0x5fb   : > { %975 = vmax.xlane.f32.xlu0 %v974_v5 }
 0x601   : > { %v1217_v6 = vpop.f32.mrb[8].mxu0 }
 0x602   : > { %v1706_v7 = vpop.f32.mrb[9].mxu0  ;;  %v1221_v12 = vsel %vm485_vm3, %v1217_v6, -inf }
 0x611   : > { %1813 = vrot.lane.b32.xlu0 %v2081_v33, %s1908_s24 }
 0x688   : > { %v976_v4 = vpop.xlane.xlu0 %975 }
 0x689   : > { %v977_v8 = vsub.f32 %v970_v2, %v976_v4 }
 0x68b   : > { %v978_v9 = vmul.f32 1.442695, %v977_v8 }
 0x68c   : > { %v1814_v13 = vpop.permute.xlu0 %1813 }
 0x68d   : > { %1830 = vpow2.f32 %v978_v9  ;;  %v1816_v14 = vunpack.i.h.bf16 %v1814_v13  ;;  %v1815_v15 = vunpack.i.l.bf16 %v1814_v13 }
 0x68f   : > { %v1738_v16 = vpack.c.bf16 %v1816_v14, %v1815_v15 }
 0x691   : > { %1739 = vmatpush3.bf16.msra.mxu1 %v1738_v16 }
 0x692   : > { %1695 = vmatprep.subr.mxu1 %v1906_v1 }
 0x697   : > { %v1831_v10 = vpop.eup %1830 }
 0x698   : > { %v980_v11 = vsel %vm485_vm3, %v1831_v10, 0.0 }
 0x699   : > { %981 = vadd.xlane.f32.xlu1 %v980_v11 }
 0x69d   : > { %1222 = vmax.xlane.f32.xlu1 %v1221_v12 }
 0x6ae   : > { %1818 = vrot.lane.b32.xlu1 %v2081_v33, %s1909_s28  ;;  %s1840_s28 = scalar_lea.vmem %s1452_s21, 128 }
 0x6af   : > { %p1841_p11 = scmp.ne.s32.totalorder %s1452_s21, %s1840_s28  ;;  %p1848_p1 = scmp.lt.s32.totalorder %s1846_s1, %s1840_s28 }
 0x6b1   : > { %p1842_p12 = pnand %p1841_p11, %p1999_p5  ;;  %p1849_p2 = por %p1848_p1, %p1847_p0 }
 0x6b3   : > { %p1843_p13 = pneg %p1842_p12 }
 0x6b5   : > { %p1850_p3 = pnand %p1849_p2, %p1843_p13 }
 0x726   : > { %v982_v17 = vpop.xlane.xlu1 %981 }
 0x727   : > { %1832 = vrcp.f32 %v982_v17 }
 0x72a   : > { %v1223_v18 = vpop.xlane.xlu1 %1222 }
 0x72b   : > { %v1224_v19 = vsub.f32 %v1217_v6, %v1223_v18 }
 0x72d   : > { %v1225_v20 = vmul.f32 1.442695, %v1224_v19 }
 0x72e   : > { %v1819_v33 = vpop.permute.xlu1 %1818 }
 0x72f   : > { %1834 = vpow2.f32 %v1225_v20  ;;  %v1821_v34 = vunpack.i.h.bf16 %v1819_v33  ;;  %v1820_v35 = vunpack.i.l.bf16 %v1819_v33 }
 0x731   : > { %v1833_v21 = vpop.eup %1832 }
 0x732   : > { %v984_v22 = vmul.f32 %v1833_v21, %v1831_v10 }
 0x734   : > { %1693 = vmatmul.mubr.msk.f32.vlgmr.msra.gmra.mrb[6].mxu1 %vm485_vm3, %v984_v22  ;;  %v985_v24 = vadd.f32 %v984_v22, %v664_v23 }
 0x735   : > { %1697 = vmatprep.mubr.msk.f32.mxu1 %vm1905_vm0, %v1906_v1  ;;  %1696 = vmatpush3.msra.mxu1 %v403_v28 }
 0x736   : > { %1744 = vmatprep.subr.bf16.mxu1 %v1904_v0  ;;  %v1745_v0 = vpack.c.bf16 %v1821_v34, %v1820_v35 }
 0x739   : > { %v1835_v26 = vpop.eup %1834 }
 0x73a   : > { %v1227_v27 = vsel %vm485_vm3, %v1835_v26, 0.0 }
 0x73b   : > { %1228 = vadd.xlane.f32.xlu0 %v1227_v27 }
 0x7c8   : > { %v1229_v29 = vpop.xlane.xlu0 %1228 }
 0x7c9   : > { %1836 = vrcp.f32 %v1229_v29 }
 0x7d3   : > { %v1837_v25 = vpop.eup %1836 }
 0x7d4   : > { %v1231_v30 = vmul.f32 %v1837_v25, %v1835_v26 }
 0x7d6   : > { %v1232_v31 = vadd.f32 %v1231_v30, %v985_v24 }
 0x7d8   : > { %v1428_v32 = vmul.f32 0.25, %v1232_v31 }
 0x7da   : > { %1429 = vst.msk [vmem:[%s373_s23] sm:$0xff] %vm485_vm3, %v1428_v32 }
 0x807   : > { %v1061_v36 = vpop.f32.mrb[6].mxu1 }
 0x808   : > { %v1694_v37 = vpop.f32.mrb[7].mxu1  ;;  %1698 = vmatmul.mubr.msk.f32.vlgmr.msra.gmra.mrb[8].mxu1 %vm405_vm1, %v1061_v36 }
 0x809   : > { %1746 = vmatpush3.bf16.msra.mxu1 %v1745_v0  ;;  %1711 = vmatprep.mubr.msk.f32.mxu1 %vm1905_vm0, %v1906_v1 }
 0x80a   : > { %1714 = vmatprep.subr.mxu1 %v1906_v1 }
 0x80c   : > { %1712 = vmatmul.mubr.msk.f32.vlgmr.msra.gmra.mrb[10].mxu1 %vm485_vm3, %v1231_v30 }
 0x80d   : > { %1716 = vmatprep.mubr.msk.f32.mxu1 %vm1905_vm0, %v1906_v1  ;;  %1715 = vmatpush3.msra.mxu1 %v404_v38  ;;  %v1602_v1 = vld [vmem:[%s2227_s5] ss:$0 sm:$0xff] }
 0x8db   : > { %v1134_v39 = vpop.f32.mrb[8].mxu1 }
 0x8dc   : > { %v1138_v40 = vadd.f32 %v1134_v39, %v2117_v62  ;;  %v1699_v41 = vpop.f32.mrb[9].mxu1 }
 0x8df   : > { %v1308_v42 = vpop.f32.mrb[10].mxu1 }
 0x8e0   : > { %v1713_v43 = vpop.f32.mrb[11].mxu1  ;;  %1717 = vmatmul.mubr.msk.f32.vlgmr.msra.gmra.mrb[12].mxu1 %vm405_vm1, %v1308_v42 }
 0x9b3   : > { %v1381_v44 = vpop.f32.mrb[12].mxu1 }
 0x9b4   : > { %v1385_v45 = vadd.f32 %v1381_v44, %v1138_v40  ;;  %v1718_v46 = vpop.f32.mrb[13].mxu1 }
 0x9b6   : > { %v1393_v48 = vadd.f32 %v1602_v1, %v1385_v45 }
 0x9b8   : > { %v1395_v49 = vadd.f32 %v1394_v47, %v1393_v48 }
 0x9ba   : > { %v1399_v50 = vsel %vm1398_vm4, %v1395_v49, 0.0 }
 0x9bb   : > { %1400 = vadd.xlane.f32.xlu1 %v1399_v50 }
 0xa48   : > { %v1401_v51 = vpop.xlane.xlu1 %1400 }
 0xa49   : > { %v1403_v52 = vmul.f32 0.03125, %v1401_v51 }
 0xa4b   : > { %v1404_v53 = vsub.f32 %v1395_v49, %v1403_v52 }
 0xa4d   : > { %v1405_v54 = vmul.f32 %v1404_v53, %v1404_v53 }
 0xa4f   : > { %v1406_v55 = vsel %vm1398_vm4, %v1405_v54, 0.0 }
 0xa50   : > { %1407 = vadd.xlane.f32.xlu0 %v1406_v55 }
 0xa51   : > { %1853 = shalt.err (!%p1850_p3)
}
 0xa52   : > { %s1854_s13 = scalar_lea.hbm %s2173_s25, 128  ;;  %s1858_s23 = scalar_lea.hbm %s2231_s9, 256 }
 0xa53   : > { %p1855_p4 = scmp.ne.s32.totalorder %s2173_s25, %s1854_s13  ;;  %p1859_p9 = scmp.lt.u32.totalorder %s2173_s25, %s2231_s9 }
 0xa54   : > { %p1860_p10 = scmp.lt.u32.totalorder %s1858_s23, %s1854_s13  ;;  %p1862_p12 = scmp.lt.u32.totalorder %s1854_s13, %s2173_s25 }
 0xa55   : > { %p1856_p7 = pnand %p1855_p4, %p1999_p5 }
 0xa56   : > { %p1861_p11 = por %p1860_p10, %p1859_p9 }
 0xa57   : > { %p1857_p8 = pneg %p1856_p7 }
 0xa58   : > { %p1863_p13 = por %p1862_p12, %p1861_p11 }
 0xa5a   : > { %p1864_p0 = pnand %p1863_p13, %p1857_p8 }
 0xa5c   : > { %1867 = shalt.err (!%p1864_p0)
}
 0xa5d   : > { %1747 = dma.vmem_to_hbm [thread:$0]  (%p1999_p5), %s1452_s21, 128, %s2173_s25, %s1435_s27   ;;  %v1603_v60 = vld [vmem:[%s2228_s6] ss:$0 sm:$0xff] }
 0xa5e   : > { %v1604_v62 = vld [vmem:[%s2229_s7] ss:$0 sm:$0xff]  ;;  %s395_s13 = scalar_lea.vmem %s2230_s8, %s2032_s26 }
 0xadd   : > { %v1408_v56 = vpop.xlane.xlu0 %1407 }
 0xade   : > { %v1409_v57 = vmul.f32 0.03125, %v1408_v56 }
 0xae0   : > { %v1410_v58 = vadd.f32 1e-05, %v1409_v57 }
 0xae2   : > { %1838 = vrsqrt.f32 %v1410_v58 }
 0xaec   : > { %v1839_v59 = vpop.eup %1838 }
 0xaed   : > { %v1412_v61 = vmul.f32 %v1839_v59, %v1404_v53 }
 0xaef   : > { %v1419_v63 = vmul.f32 %v1603_v60, %v1412_v61 }
 0xaf1   : > { %v1426_v2 = vadd.f32 %v1604_v62, %v1419_v63 }
 0xaf3   : > { %1427 = vst.msk [vmem:[%s395_s13] sm:$0xff] %vm1398_vm4, %v1426_v2 }
 0xaf4 PF: > { %p1753_p5 = scmp.ge.s32.totalorder %s1902_s12, 2  ;;  %s1470_s21 = sand.u32 1, %s1890_s30  }
 0xaf5   : > { %s1471_s25 = scalar_lea.sflag [#allocation3], %s1470_s21 }
 0xaf6   : > { %p1750_p1 = pnand %p1753_p5, %p2003_p6 }
 0xaf8   : > { %1885 = dma.done.wait (!%p1750_p1), %s1471_s25, 128  }
 0xaf9   : > { %1887 = vsyncadd (!%p1750_p1), %s1471_s25, 4294967168  ;;  %p20_p2 = scmp.ge.s32.totalorder %s1986_s15, 4   ;;  %s2240_s30 = smov %s1894_s10 }
 0xafa   : > { %s2241_s10 = smov %s1898_s11  ;;  %s2242_s11 = smov %s1997_s18 }
 0xafb   : > { %s2243_s12 = smov %s1986_s15  ;;  %22 = sbr.rel (!%p20_p2) target bundleno = 6 (0x6), region = 108 }
 0xb02   :  { %1476 = vsyncpa [#allocation3], 1 }
 0xb03   :  { %1478 = vsyncpa [#allocation3 + $0x1], 1 }

</bundles_post_ra>
